<compile_context>
chip_gen: v5e
topology: v5e:2x2
jax: 0.10.0
libtpu: 0.0.40
codegen_flags: <defaults>
</compile_context>

<pallas_src>
import functools
import math

import jax
import jax.numpy as jnp
from jax.experimental import pallas as pl
from jax.experimental.pallas import tpu as pltpu


def _dot_tA(a, b):
    """a: (K, M), b: (K, N) -> (M, N); contracts axis 0 of both (MXU trans_a)."""
    return jax.lax.dot_general(
        a, b, (((0,), (0,)), ((), ())), preferred_element_type=jnp.float32
    )


def _dot_tB(a, b):
    """a: (M, K), b: (N, K) -> (M, N); contracts axis 1 of both (MXU trans_b)."""
    return jax.lax.dot_general(
        a, b, (((1,), (1,)), ((), ())), preferred_element_type=jnp.float32
    )


def _attention_kernel(
    x_ref,      # (1, Cin, tq)   bf16   query tile, channels on sublanes, S on lanes
    kv_ref,     # (1, Ckv, Skv)  bf16   full key/value sequence
    wqr_ref,    # (Cin, D+Cout)  bf16   packed [Wq | Wres]
    wkv_ref,    # (Ckv, 2D)      bf16   packed [Wk | Wv]
    wo_ref,     # (D, Cout)      bf16
    bres_ref,   # (Cout, 1)      f32
    y_ref,      # (1, Cout, tq)  f32    pre-GroupNorm output (lane-dense in S)
    *,
    num_heads: int,
    dim_heads: int,
):
    D = num_heads * dim_heads
    x = x_ref[0]          # (Cin, tq)  bf16
    kv = kv_ref[0]        # (Ckv, Skv) bf16

    # Packed 1x1-conv projections (tiny channel contraction dims, two matmuls).
    qr = _dot_tA(wqr_ref[...], x)       # (D+Cout, tq) f32 = [q^T ; res^T]
    kvp = _dot_tA(wkv_ref[...], kv)     # (2D,     Skv) f32 = [k^T ; v^T]

    q_t = qr[:D]                        # (D, tq)
    res_t = qr[D:] + bres_ref[...]      # (Cout, tq): residual 1x1 conv + bias
    k_t = kvp[:D]                       # (D, Skv)
    v_t = kvp[D:]                       # (D, Skv)

    scale = 1.0 / math.sqrt(dim_heads)

    # Per-head scaled-dot-product attention in transposed layout; head outputs are
    # concatenated on the D (sublane) axis so Wo is applied with one wide matmul.
    oh_parts = []
    for h in range(num_heads):
        lo, hi = h * dim_heads, (h + 1) * dim_heads
        qh = (q_t[lo:hi] * scale).astype(jnp.bfloat16)   # (dh, tq)  scale folded into q
        kh = k_t[lo:hi].astype(jnp.bfloat16)             # (dh, Skv)
        vh = v_t[lo:hi].astype(jnp.bfloat16)             # (dh, Skv)

        s = _dot_tA(qh, kh)                              # (tq, Skv) f32
        s = s - jnp.max(s, axis=-1, keepdims=True)
        p = jnp.exp(s)                                   # f32 (EUP)
        inv_l = pl.reciprocal(jnp.sum(p, axis=-1, keepdims=True), approx=True)
        p = (p * inv_l).astype(jnp.bfloat16)             # (tq, Skv) bf16

        oh_parts.append(_dot_tB(vh, p))                  # (dh, tq) f32

    oh_t = jnp.concatenate(oh_parts, axis=0).astype(jnp.bfloat16)  # (D, tq)
    out_t = _dot_tA(wo_ref[...], oh_t)                   # (Cout, tq) f32, single Wo matmul

    y_ref[0] = (out_t + res_t).astype(y_ref.dtype)


def _group_norm_kernel(y_ref, gamma_ref, beta_ref, o_ref, *, eps: float):
    # GroupNorm with num_groups=1: normalize over all channels & spatial per sample.
    y = y_ref[0]                                         # (Cout, S) f32
    mu = jnp.mean(y)
    var = jnp.mean((y - mu) * (y - mu))
    yn = (y - mu) * jax.lax.rsqrt(var + eps)
    o_ref[0] = (yn * gamma_ref[...] + beta_ref[...]).astype(o_ref.dtype)


def _pick_query_tile(s):
    for t in (512, 256, 128):
        if s % t == 0:
            return t
    return s


def attention_block_forward(
    x, condition, params, *, num_heads, dim_heads, eps=1e-5, query_tile=None
):
    """x: (B, Cin, H, W) NCHW; condition: (B, Ccond, Hc, Wc) NCHW or None."""
    B, Cin, H, W = x.shape
    S = H * W
    kv = x if condition is None else condition
    Ckv = kv.shape[1]
    Skv = kv.shape[2] * kv.shape[3]

    wq, wk, wv, wo = params["wq"], params["wk"], params["wv"], params["wo"]
    wres, bres = params["wres"], params["bres"]
    gamma, beta = params["gamma"], params["beta"]
    D = num_heads * dim_heads
    Cout = wo.shape[1]

    # NCHW is already channel-major: only flatten spatial (no transposes, no copies).
    x_cs = x.reshape(B, Cin, S).astype(jnp.bfloat16)
    kv_cs = kv.reshape(B, Ckv, Skv).astype(jnp.bfloat16)

    # Pack the tiny-K projections and cast MXU operands to bf16.
    w_qr = jnp.concatenate([wq, wres], axis=1).astype(jnp.bfloat16)   # (Cin, D+Cout)
    w_kv = jnp.concatenate([wk, wv], axis=1).astype(jnp.bfloat16)     # (Ckv, 2D)
    wo_b = wo.astype(jnp.bfloat16)                                    # (D, Cout)
    bres_c = bres.reshape(Cout, 1).astype(jnp.float32)
    gamma_c = gamma.reshape(Cout, 1).astype(jnp.float32)
    beta_c = beta.reshape(Cout, 1).astype(jnp.float32)

    tq = query_tile if query_tile is not None else _pick_query_tile(S)
    assert S % tq == 0 and (tq == S or tq % 128 == 0), (
        "query tile must be the full sequence or a multiple of 128"
    )
    nqt = S // tq

    cparams = pltpu.CompilerParams(
        dimension_semantics=("parallel", "parallel"),
        vmem_limit_bytes=48 * 1024 * 1024,
    )

    kernel1 = functools.partial(
        _attention_kernel, num_heads=num_heads, dim_heads=dim_heads
    )
    # Pass 1: projections + attention + output projection + residual conv.
    y = pl.pallas_call(
        kernel1,
        out_shape=jax.ShapeDtypeStruct((B, Cout, S), jnp.float32),
        grid_spec=pltpu.PrefetchScalarGridSpec(
            num_scalar_prefetch=0,
            grid=(B, nqt),
            in_specs=[
                pl.BlockSpec((1, Cin, tq), lambda b, qi: (b, 0, qi)),
                pl.BlockSpec((1, Ckv, Skv), lambda b, qi: (b, 0, 0)),
                pl.BlockSpec((Cin, D + Cout), lambda b, qi: (0, 0)),
                pl.BlockSpec((Ckv, 2 * D), lambda b, qi: (0, 0)),
                pl.BlockSpec((D, Cout), lambda b, qi: (0, 0)),
                pl.BlockSpec((Cout, 1), lambda b, qi: (0, 0)),
            ],
            out_specs=pl.BlockSpec((1, Cout, tq), lambda b, qi: (b, 0, qi)),
        ),
        compiler_params=cparams,
    )(x_cs, kv_cs, w_qr, w_kv, wo_b, bres_c)

    # Pass 2: cheap memory-bound GroupNorm (needs whole-sample statistics).
    kernel2 = functools.partial(_group_norm_kernel, eps=eps)
    out = pl.pallas_call(
        kernel2,
        out_shape=jax.ShapeDtypeStruct((B, Cout, S), jnp.float32),
        grid_spec=pltpu.PrefetchScalarGridSpec(
            num_scalar_prefetch=0,
            grid=(B,),
            in_specs=[
                pl.BlockSpec((1, Cout, S), lambda b: (b, 0, 0)),
                pl.BlockSpec((Cout, 1), lambda b: (0, 0)),
                pl.BlockSpec((Cout, 1), lambda b: (0, 0)),
            ],
            out_specs=pl.BlockSpec((1, Cout, S), lambda b: (b, 0, 0)),
        ),
        compiler_params=pltpu.CompilerParams(
            dimension_semantics=("parallel",),
            vmem_limit_bytes=48 * 1024 * 1024,
        ),
    )(y, gamma_c, beta_c)

    # (B, Cout, S) -> NCHW (pure reshape, no transpose / no extra HBM pass).
    return out.reshape(B, Cout, H, W)


def reference_forward(x, condition, params, *, num_heads, dim_heads, eps=1e-5):
    """Pure-JAX f32 mirror of the PyTorch AttentionBlockBase forward (eval mode)."""
    B, Cin, H, W = x.shape
    S = H * W
    kv = x if condition is None else condition
    Ckv = kv.shape[1]
    Skv = kv.shape[2] * kv.shape[3]
    Cout = params["wo"].shape[1]

    x_seq = jnp.transpose(x.reshape(B, Cin, S), (0, 2, 1))
    kv_seq = jnp.transpose(kv.reshape(B, Ckv, Skv), (0, 2, 1))

    q = x_seq @ params["wq"]
    k = kv_seq @ params["wk"]
    v = kv_seq @ params["wv"]

    def apart(t):
        b, s, _ = t.shape
        t = t.reshape(b, s, num_heads, dim_heads).transpose(0, 2, 1, 3)
        return t.reshape(b * num_heads, s, dim_heads)

    qh, kh, vh = apart(q), apart(k), apart(v)
    w = jnp.einsum("bqd,bkd->bqk", qh, kh) / math.sqrt(dim_heads)
    w = jax.nn.softmax(w, axis=-1)
    o = jnp.einsum("bqk,bkd->bqd", w, vh)
    o = o.reshape(B, num_heads, S, dim_heads).transpose(0, 2, 1, 3).reshape(B, S, -1)
    att = o @ params["wo"]
    res = x_seq @ params["wres"] + params["bres"]
    y = att + res  # (B, S, Cout)

    mu = y.mean(axis=(1, 2), keepdims=True)
    var = ((y - mu) ** 2).mean(axis=(1, 2), keepdims=True)
    yn = (y - mu) * jax.lax.rsqrt(var + eps)
    yn = yn * params["gamma"] + params["beta"]
    return jnp.transpose(yn, (0, 2, 1)).reshape(B, Cout, H, W)


if __name__ == "__main__":
    # AttentionBlockBase(dim_in=4, dim_out=8, num_heads=2, dim_heads=8, dim_condition=6)
    B, dim_in, dim_out, dim_cond = 2, 4, 8, 6
    num_heads, dim_heads = 2, 8
    H = W = 16                      # S = 256
    D = num_heads * dim_heads

    key = jax.random.PRNGKey(0)
    keys = jax.random.split(key, 10)

    x = jax.random.normal(keys[0], (B, dim_in, H, W), jnp.float32)
    condition = jax.random.normal(keys[1], (B, dim_cond, H, W), jnp.float32)

    def init(k, shape, scale=0.1):
        return (scale * jax.random.normal(k, shape)).astype(jnp.float32)

    # Deterministic synthetic parameters (1x1 conv weights stored as (in, out)).
    params = {
        "wq": init(keys[2], (dim_in, D)),
        "wk": init(keys[3], (dim_cond, D)),
        "wv": init(keys[4], (dim_cond, D)),
        "wo": init(keys[5], (D, dim_out)),
        # residual conv exists because dim_in != dim_out; bias=True by default.
        "wres": init(keys[6], (dim_in, dim_out)),
        "bres": init(keys[7], (1, dim_out)),
        # GroupNorm affine params (PyTorch init: weight=1, bias=0).
        "gamma": jnp.ones((1, dim_out), jnp.float32),
        "beta": jnp.zeros((1, dim_out), jnp.float32),
    }

    ref = reference_forward(
        x, condition, params, num_heads=num_heads, dim_heads=dim_heads
    )

    # Default path (single query tile: tq == S).
    out = attention_block_forward(
        x, condition, params, num_heads=num_heads, dim_heads=dim_heads
    )
    out = jax.block_until_ready(out)
    assert out.shape == (B, dim_out, H, W)
    # bf16 MXU operands + approx reciprocal => tolerance relaxed vs pure-f32 reference.
    assert jnp.allclose(out, ref, rtol=5e-2, atol=5e-2), (
        "mismatch vs reference (tq=S): max abs err = %g"
        % float(jnp.max(jnp.abs(out - ref)))
    )

    # Tiled query path (exercises grid=(B, S//tq) and the 2-pass GroupNorm).
    out_tiled = attention_block_forward(
        x, condition, params, num_heads=num_heads, dim_heads=dim_heads, query_tile=128
    )
    out_tiled = jax.block_until_ready(out_tiled)
    assert jnp.allclose(out_tiled, ref, rtol=5e-2, atol=5e-2), (
        "mismatch vs reference (tq=128): max abs err = %g"
        % float(jnp.max(jnp.abs(out_tiled - ref)))
    )

    print("KERNEL_OK")
</pallas_src>

<mosaic_0001>
module attributes {stable_mosaic.version = 11 : i64} {
  func.func @_attention_kernel(%arg0: i32, %arg1: i32, %arg2: memref<1x4x256xbf16, #tpu.memory_space<vmem>>, %arg3: memref<1x6x256xbf16, #tpu.memory_space<vmem>>, %arg4: memref<4x24xbf16, #tpu.memory_space<vmem>>, %arg5: memref<6x32xbf16, #tpu.memory_space<vmem>>, %arg6: memref<16x8xbf16, #tpu.memory_space<vmem>>, %arg7: memref<8x1xf32, #tpu.memory_space<vmem>>, %arg8: memref<1x8x256xf32, #tpu.memory_space<vmem>>) attributes {dimension_semantics = [#tpu.dimension_semantics<parallel>, #tpu.dimension_semantics<parallel>], iteration_bounds = array<i64: 2, 1>, scalar_prefetch = 0 : i64, scratch_operands = 0 : i64, tpu.core_type = #tpu.core_type<tc>, window_params = [{transform_indices = @transform_0, window_bounds = array<i64: 1, 4, 256>}, {transform_indices = @transform_1, window_bounds = array<i64: 1, 6, 256>}, {pipeline_mode = #tpu.pipeline_mode<synchronous>, transform_indices = @transform_2, window_bounds = array<i64: 4, 24>}, {pipeline_mode = #tpu.pipeline_mode<synchronous>, transform_indices = @transform_3, window_bounds = array<i64: 6, 32>}, {pipeline_mode = #tpu.pipeline_mode<synchronous>, transform_indices = @transform_4, window_bounds = array<i64: 16, 8>}, {pipeline_mode = #tpu.pipeline_mode<synchronous>, transform_indices = @transform_5, window_bounds = array<i64: 8, 1>}, {transform_indices = @transform_6, window_bounds = array<i64: 1, 8, 256>}]} {
    %c0 = arith.constant 0 : index
    %c0_0 = arith.constant 0 : index
    %c0_1 = arith.constant 0 : index
    %0 = vector.load %arg2[%c0, %c0_0, %c0_1] : memref<1x4x256xbf16, #tpu.memory_space<vmem>>, vector<1x4x256xbf16>
    %1 = vector.shape_cast %0 : vector<1x4x256xbf16> to vector<4x256xbf16>
    %c0_2 = arith.constant 0 : index
    %c0_3 = arith.constant 0 : index
    %c0_4 = arith.constant 0 : index
    %2 = vector.load %arg3[%c0_2, %c0_3, %c0_4] : memref<1x6x256xbf16, #tpu.memory_space<vmem>>, vector<1x6x256xbf16>
    %3 = vector.shape_cast %2 : vector<1x6x256xbf16> to vector<6x256xbf16>
    %c0_5 = arith.constant 0 : index
    %c0_6 = arith.constant 0 : index
    %4 = vector.load %arg4[%c0_5, %c0_6] : memref<4x24xbf16, #tpu.memory_space<vmem>>, vector<4x24xbf16>
    %cst = arith.constant dense<0.000000e+00> : vector<24x256xf32>
    %5 = tpu.matmul %4, %1, %cst {dimension_numbers = #tpu.dot_dimension_numbers<[0], [0], [1], [1], [0, 1, 1, 1], [], []>} : vector<4x24xbf16>, vector<4x256xbf16>, vector<24x256xf32> -> vector<24x256xf32>
    %c0_7 = arith.constant 0 : index
    %c0_8 = arith.constant 0 : index
    %6 = vector.load %arg5[%c0_7, %c0_8] : memref<6x32xbf16, #tpu.memory_space<vmem>>, vector<6x32xbf16>
    %cst_9 = arith.constant dense<0.000000e+00> : vector<32x256xf32>
    %7 = tpu.matmul %6, %3, %cst_9 {dimension_numbers = #tpu.dot_dimension_numbers<[0], [0], [1], [1], [0, 1, 1, 1], [], []>} : vector<6x32xbf16>, vector<6x256xbf16>, vector<32x256xf32> -> vector<32x256xf32>
    %8 = vector.extract_strided_slice %5 {offsets = [0, 0], sizes = [16, 256], strides = [1, 1]} : vector<24x256xf32> to vector<16x256xf32>
    %9 = vector.extract_strided_slice %5 {offsets = [16, 0], sizes = [8, 256], strides = [1, 1]} : vector<24x256xf32> to vector<8x256xf32>
    %c0_10 = arith.constant 0 : index
    %c0_11 = arith.constant 0 : index
    %10 = vector.load %arg7[%c0_10, %c0_11] : memref<8x1xf32, #tpu.memory_space<vmem>>, vector<8x1xf32>
    %11 = vector.broadcast %10 : vector<8x1xf32> to vector<8x256xf32>
    %12 = arith.addf %9, %11 : vector<8x256xf32>
    %13 = vector.extract_strided_slice %7 {offsets = [0, 0], sizes = [16, 256], strides = [1, 1]} : vector<32x256xf32> to vector<16x256xf32>
    %14 = vector.extract_strided_slice %7 {offsets = [16, 0], sizes = [16, 256], strides = [1, 1]} : vector<32x256xf32> to vector<16x256xf32>
    %15 = vector.extract_strided_slice %8 {offsets = [0, 0], sizes = [8, 256], strides = [1, 1]} : vector<16x256xf32> to vector<8x256xf32>
    %cst_12 = arith.constant 0.353553385 : f32
    %16 = vector.broadcast %cst_12 : f32 to vector<8x256xf32>
    %17 = arith.mulf %15, %16 : vector<8x256xf32>
    %18 = arith.truncf %17 : vector<8x256xf32> to vector<8x256xbf16>
    %19 = vector.extract_strided_slice %13 {offsets = [0, 0], sizes = [8, 256], strides = [1, 1]} : vector<16x256xf32> to vector<8x256xf32>
    %20 = arith.truncf %19 : vector<8x256xf32> to vector<8x256xbf16>
    %21 = vector.extract_strided_slice %14 {offsets = [0, 0], sizes = [8, 256], strides = [1, 1]} : vector<16x256xf32> to vector<8x256xf32>
    %22 = arith.truncf %21 : vector<8x256xf32> to vector<8x256xbf16>
    %cst_13 = arith.constant dense<0.000000e+00> : vector<256x256xf32>
    %23 = tpu.matmul %18, %20, %cst_13 {dimension_numbers = #tpu.dot_dimension_numbers<[0], [0], [1], [1], [0, 1, 1, 1], [], []>} : vector<8x256xbf16>, vector<8x256xbf16>, vector<256x256xf32> -> vector<256x256xf32>
    %cst_14 = arith.constant dense<0xFF800000> : vector<256xf32>
    %24 = vector.multi_reduction <maximumf>, %23, %cst_14 [1] : vector<256x256xf32> to vector<256xf32>
    %25 = vector.shape_cast %24 : vector<256xf32> to vector<256x1xf32>
    %26 = vector.broadcast %25 : vector<256x1xf32> to vector<256x256xf32>
    %27 = arith.subf %23, %26 : vector<256x256xf32>
    %28 = math.exp %27 : vector<256x256xf32>
    %cst_15 = arith.constant dense<0.000000e+00> : vector<256xf32>
    %29 = vector.multi_reduction <add>, %28, %cst_15 [1] : vector<256x256xf32> to vector<256xf32>
    %30 = vector.shape_cast %29 : vector<256xf32> to vector<256x1xf32>
    %31 = tpu.reciprocal %30 {approx = true} : vector<256x1xf32> -> vector<256x1xf32>
    %32 = vector.broadcast %31 : vector<256x1xf32> to vector<256x256xf32>
    %33 = arith.mulf %28, %32 : vector<256x256xf32>
    %34 = arith.truncf %33 : vector<256x256xf32> to vector<256x256xbf16>
    %cst_16 = arith.constant dense<0.000000e+00> : vector<8x256xf32>
    %35 = tpu.matmul %22, %34, %cst_16 {dimension_numbers = #tpu.dot_dimension_numbers<[1], [1], [0], [0], [0, 0, 1, 0], [], []>} : vector<8x256xbf16>, vector<256x256xbf16>, vector<8x256xf32> -> vector<8x256xf32>
    %36 = vector.extract_strided_slice %8 {offsets = [8, 0], sizes = [8, 256], strides = [1, 1]} : vector<16x256xf32> to vector<8x256xf32>
    %cst_17 = arith.constant 0.353553385 : f32
    %37 = vector.broadcast %cst_17 : f32 to vector<8x256xf32>
    %38 = arith.mulf %36, %37 : vector<8x256xf32>
    %39 = arith.truncf %38 : vector<8x256xf32> to vector<8x256xbf16>
    %40 = vector.extract_strided_slice %13 {offsets = [8, 0], sizes = [8, 256], strides = [1, 1]} : vector<16x256xf32> to vector<8x256xf32>
    %41 = arith.truncf %40 : vector<8x256xf32> to vector<8x256xbf16>
    %42 = vector.extract_strided_slice %14 {offsets = [8, 0], sizes = [8, 256], strides = [1, 1]} : vector<16x256xf32> to vector<8x256xf32>
    %43 = arith.truncf %42 : vector<8x256xf32> to vector<8x256xbf16>
    %cst_18 = arith.constant dense<0.000000e+00> : vector<256x256xf32>
    %44 = tpu.matmul %39, %41, %cst_18 {dimension_numbers = #tpu.dot_dimension_numbers<[0], [0], [1], [1], [0, 1, 1, 1], [], []>} : vector<8x256xbf16>, vector<8x256xbf16>, vector<256x256xf32> -> vector<256x256xf32>
    %cst_19 = arith.constant dense<0xFF800000> : vector<256xf32>
    %45 = vector.multi_reduction <maximumf>, %44, %cst_19 [1] : vector<256x256xf32> to vector<256xf32>
    %46 = vector.shape_cast %45 : vector<256xf32> to vector<256x1xf32>
    %47 = vector.broadcast %46 : vector<256x1xf32> to vector<256x256xf32>
    %48 = arith.subf %44, %47 : vector<256x256xf32>
    %49 = math.exp %48 : vector<256x256xf32>
    %cst_20 = arith.constant dense<0.000000e+00> : vector<256xf32>
    %50 = vector.multi_reduction <add>, %49, %cst_20 [1] : vector<256x256xf32> to vector<256xf32>
    %51 = vector.shape_cast %50 : vector<256xf32> to vector<256x1xf32>
    %52 = tpu.reciprocal %51 {approx = true} : vector<256x1xf32> -> vector<256x1xf32>
    %53 = vector.broadcast %52 : vector<256x1xf32> to vector<256x256xf32>
    %54 = arith.mulf %49, %53 : vector<256x256xf32>
    %55 = arith.truncf %54 : vector<256x256xf32> to vector<256x256xbf16>
    %cst_21 = arith.constant dense<0.000000e+00> : vector<8x256xf32>
    %56 = tpu.matmul %43, %55, %cst_21 {dimension_numbers = #tpu.dot_dimension_numbers<[1], [1], [0], [0], [0, 0, 1, 0], [], []>} : vector<8x256xbf16>, vector<256x256xbf16>, vector<8x256xf32> -> vector<8x256xf32>
    %57 = tpu.concatenate %35, %56 in 0 : vector<8x256xf32>, vector<8x256xf32> -> vector<16x256xf32>
    %58 = arith.truncf %57 : vector<16x256xf32> to vector<16x256xbf16>
    %c0_22 = arith.constant 0 : index
    %c0_23 = arith.constant 0 : index
    %59 = vector.load %arg6[%c0_22, %c0_23] : memref<16x8xbf16, #tpu.memory_space<vmem>>, vector<16x8xbf16>
    %cst_24 = arith.constant dense<0.000000e+00> : vector<8x256xf32>
    %60 = tpu.matmul %59, %58, %cst_24 {dimension_numbers = #tpu.dot_dimension_numbers<[0], [0], [1], [1], [0, 1, 1, 1], [], []>} : vector<16x8xbf16>, vector<16x256xbf16>, vector<8x256xf32> -> vector<8x256xf32>
    %61 = arith.addf %60, %12 : vector<8x256xf32>
    %c0_25 = arith.constant 0 : index
    %c0_26 = arith.constant 0 : index
    %c0_27 = arith.constant 0 : index
    %62 = vector.load %arg8[%c0_25, %c0_26, %c0_27] : memref<1x8x256xf32, #tpu.memory_space<vmem>>, vector<1x8x256xf32>
    %63 = vector.shape_cast %62 : vector<1x8x256xf32> to vector<8x256xf32>
    %64 = vector.shape_cast %61 : vector<8x256xf32> to vector<1x8x256xf32>
    tpu.vector_store %arg8[%c0_25, %c0_26, %c0_27], %64 {strides = array<i32>} : memref<1x8x256xf32, #tpu.memory_space<vmem>>, vector<1x8x256xf32>,
    return
  }
  func.func @transform_0(%arg0: i32, %arg1: i32) -> (i32, i32, i32) {
    %c0_i32 = arith.constant 0 : i32
    %c0_i32_0 = arith.constant 0 : i32
    return %arg0, %c0_i32, %arg1 : i32, i32, i32
  }
  func.func @transform_1(%arg0: i32, %arg1: i32) -> (i32, i32, i32) {
    %c0_i32 = arith.constant 0 : i32
    %c0_i32_0 = arith.constant 0 : i32
    %c0_i32_1 = arith.constant 0 : i32
    return %arg0, %c0_i32, %c0_i32_0 : i32, i32, i32
  }
  func.func @transform_2(%arg0: i32, %arg1: i32) -> (i32, i32) {
    %c0_i32 = arith.constant 0 : i32
    %c0_i32_0 = arith.constant 0 : i32
    %c0_i32_1 = arith.constant 0 : i32
    return %c0_i32, %c0_i32_0 : i32, i32
  }
  func.func @transform_3(%arg0: i32, %arg1: i32) -> (i32, i32) {
    %c0_i32 = arith.constant 0 : i32
    %c0_i32_0 = arith.constant 0 : i32
    %c0_i32_1 = arith.constant 0 : i32
    return %c0_i32, %c0_i32_0 : i32, i32
  }
  func.func @transform_4(%arg0: i32, %arg1: i32) -> (i32, i32) {
    %c0_i32 = arith.constant 0 : i32
    %c0_i32_0 = arith.constant 0 : i32
    %c0_i32_1 = arith.constant 0 : i32
    return %c0_i32, %c0_i32_0 : i32, i32
  }
  func.func @transform_5(%arg0: i32, %arg1: i32) -> (i32, i32) {
    %c0_i32 = arith.constant 0 : i32
    %c0_i32_0 = arith.constant 0 : i32
    %c0_i32_1 = arith.constant 0 : i32
    return %c0_i32, %c0_i32_0 : i32, i32
  }
  func.func @transform_6(%arg0: i32, %arg1: i32) -> (i32, i32, i32) {
    %c0_i32 = arith.constant 0 : i32
    %c0_i32_0 = arith.constant 0 : i32
    return %arg0, %c0_i32, %arg1 : i32, i32, i32
  }
}

</mosaic_0001>

<bundles_post_ra>
// kernel: tpu_custom_call.1
= control target key start
LH: loop header
LB: loop body
LE: loop exit
PB: predicated region body
PF: predicated region fallthrough
CT: control target
= control target key end

     0   :  { %11 = vsyncpa [#allocation3], 0  ;;  %s4408_s0 = inlined_call_operand.vmem [shape: bf16[2,4,256], index: 0, kind: input, shape index: {}]   ;;  %s4409_s1 = inlined_call_operand.vmem [shape: bf16[2,6,256], index: 1, kind: input, shape index: {}]   ;;  %s4410_s2 = inlined_call_operand.vmem [shape: bf16[4,24], index: 2, kind: input, shape index: {}]   ;;  %s4411_s3 = inlined_call_operand.vmem [shape: bf16[6,32], index: 3, kind: input, shape index: {}]   ;;  %s4412_s4 = inlined_call_operand.vmem [shape: bf16[16,8], index: 4, kind: input, shape index: {}]   ;;  %s4413_s5 = inlined_call_operand.vmem [shape: f32[8,1], index: 5, kind: input, shape index: {}]   ;;  %s4414_s6 = inlined_call_operand.hbm [shape: f32[2,8,256], index: 6, kind: output, shape index: {}]  }
   0x1   :  { %13 = vsyncpa [#allocation3 + $0x1], 0  ;;  %s2933_s21 = smov 0   ;;  %s2935_s22 = smov 0  }
   0x2   :  { %s2937_s23 = smov 0   ;;  %s2939_s24 = smov 0  }
   0x3   :  { %s2941_s25 = smov 0   ;;  %s2943_s26 = smov 0  }
   0x4 LB: > { %s2278_s27 = sadd.s32 4294967295, %s2895_s26   ;;  %s2279_s28 = sadd.s32 4294967294, %s2895_s26   ;;  %s2895_s26 = sphi %s2943_s26, %s19_s26   ;;  %s2891_s25 = sphi %s2941_s25, %s4627_s25   ;;  %s2887_s24 = sphi %s2939_s24, %s4626_s24   ;;  %s2883_s23 = sphi %s2937_s23, %s4625_s23   ;;  %s2879_s22 = sphi %s2935_s22, %s4624_s22   ;;  %s2875_s21 = sphi %s2933_s21, %s4623_s21  }
   0x5   : > { %s31_s29 = sadd.s32 1, %s2891_s25  ;;  %s178_s30 = sadd.s32 1, %s2883_s23 }
   0x6   : > { %p33_p0 = scmp.ge.s32.totalorder %s31_s29, 2  ;;  %p188_p1 = scmp.ne.s32.totalorder %s2883_s23, %s2879_s22 }
   0x7   : > { %p189_p2 = scmp.eq.s32.totalorder %s2278_s27, 1  ;;  %p194_p3 = scmp.ne.s32.totalorder %s2879_s22, %s2875_s21 }
   0x8   : > { %s4629_s29 = smov (%p33_p0, %s31_s29), 0  ;;  %p195_p5 = scmp.eq.s32.totalorder %s2279_s28, 1 }
   0x9   : > { %p2973_p4 = por %p189_p2, %p188_p1  ;;  %s173_s8 = ssub.s32 %s2891_s25, %s4629_s29 }
   0xa   : > { %p2282_p6 = scmp.ge.s32.totalorder %s2895_s26, 1  ;;  %p176_p7 = scmp.eq.s32.totalorder %s173_s8, 0 }
   0xb   : > { %p2980_p8 = por %p195_p5, %p194_p3  ;;  %p246_p9 = scmp.lt.s32.totalorder %s2895_s26, 3 }
   0xc   : > { %s2986_s10 = scalar_select %p176_p7, %s2883_s23, %s178_s30  }
   0xd   : > { %p247_p10 = pnand %p2282_p6, %p246_p9 }
   0xf   : > { %250 = sbr.rel (%p247_p10) target bundleno = 2355 (0x933), region = 44 }
  0x14   : > { %v304_v0 = vld [vmem:[%s4410_s2] sm:$0x3]  ;;  %p286_p11 = scmp.lt.s32.totalorder %s2887_s24, 1  ;;  %vm332_vm0 = vcmask 1041408   ;;  %vm325_vm1 = vcmask 31744   ;;  %vm402_vm2 = vcmask 1042432  }
  0x15   : > { %305 = vxpose.xlu0.c.b16.start.end [1/1] (short) (narrow) %v304_v0, 32  ;;  %v373_v6 = vld [vmem:[%s4411_s3] sm:$0x7]  ;;  %vm395_vm3 = vcmask 48128   ;;  %vm536_vm4 = vcmask 1043456   ;;  %vm487_vm5 = vcmask 64512  }
  0x16   : > { %s287_s13 = scalar_select %p286_p11, %s2887_s24, 1  ;;  %vm2139_vm6 = vcmask 130048  }
  0x18   : > { %s2371_s14 = sshll.u32 %s287_s13, 2  ;;  %s2372_s20 = sshll.u32 %s287_s13, 3 }
  0x19   : > { %s293_s17 = scalar_lea.vmem %s4408_s0, %s2371_s14  ;;  %s299_s30 = scalar_lea.vmem %s4409_s1, %s2372_s20 }
  0x1a   : > { %v302_v1 = vld [vmem:[%s293_s17] sm:$0xf]  ;;  %s282_s14 = sand.u32 1, %s2879_s22   ;;  %s2374_s17 = sshll.u32 %s2887_s24, 4 }
  0x1b   : > { %322 = vst [vmem:[#allocation1] ss:$4 sm:$0xff] %v302_v1  ;;  %v303_v9 = vld [vmem:[%s299_s30] sm:$0x77]  ;;  %s2283_s15 = sshll.u32 %s282_s14, 4  ;;  %s2185_s20 = scalar_lea.hbm %s4414_s6, %s2374_s17 }
  0x1c   : > { %v391_v10 = vunpack.c.l.b16 %v303_v9  ;;  %v392_v11 = vunpack.c.h.b16 %v303_v9  ;;  %s284_s16 = scalar_lea.vmem [#allocation2], %s2283_s15  ;;  %s2189_s28 = sshll.u32 %s2185_s20, 4  ;;  %s2190_s28 = int_to_ptr.hbm [resolvable:$true] %s2189_s28 }
  0x1d   : > { %s2187_s27 = sshll.u32 %s284_s16, 4  ;;  %s2172_s30 = scalar_lea.sflag [#allocation3], %s282_s14  ;;  %s2188_s27 = int_to_ptr.vmem [resolvable:$true] %s2187_s27 }
  0x1e   : > { %v393_v12 = vpack.c.b16 %v391_v10, %v391_v10  ;;  %v394_v13 = vpack.c.b16 %v392_v11, %v392_v11  ;;  %s2831_s8 = sshra.s32 %s2190_s28, 4  ;;  %s2837_s13 = scalar_lea.hbm %s4414_s6, 32  ;;  %s2832_s8 = int_to_ptr.hbm [resolvable:$true] %s2831_s8 }
  0x1f   : > { %s2833_s11 = scalar_lea.hbm %s2832_s8, 16  ;;  %p2838_p1 = scmp.lt.s32.totalorder %s2832_s8, %s4414_s6 }
  0x20   : > { %v404_v14 = vsel %vm402_vm2, %v393_v12, 0  ;;  %v407_v15 = vsel %vm402_vm2, %v394_v13, 0  ;;  %p2834_p12 = scmp.ne.s32.totalorder %s2832_s8, %s2833_s11  ;;  %p2839_p2 = scmp.lt.s32.totalorder %s2837_s13, %s2833_s11 }
  0x21   : > { %416 = vmatpush.bf16.msra.mxu2 %v404_v14  ;;  %435 = vmatpush.bf16.msra.mxu3 %v407_v15 }
  0x22   : > { %v323_v2 = vld.sshfl [vmem:[#allocation1] sm:$0xff pattern:$0x73625140]  ;;  %v324_v3 = vld.sshfl [vmem:[#allocation1 + $0x8] sm:$0xff pattern:$0x73625140]  ;;  %p2835_p13 = pnand %p2834_p12, %p2973_p4  ;;  %p2840_p3 = por %p2839_p2, %p2838_p1 }
  0x23   : > { %v333_v4 = vsel %vm332_vm0, %v323_v2, 0  ;;  %v335_v5 = vsel %vm332_vm0, %v324_v3, 0 }
  0x24   : > { %344 = vmatpush.bf16.msra.mxu0 %v333_v4  ;;  %362 = vmatpush.bf16.msra.mxu1 %v335_v5  ;;  %p2836_p0 = pneg %p2835_p13 }
  0x26   : > { %p2841_p5 = pnand %p2840_p3, %p2836_p0 }
  0x35   : > { %374 = vxpose.xlu0.c.b16.start.end [1/1] (short) (narrow) %v373_v6, 32 }
  0xc1   : > { %v313_v7 = vpop.trf.xlu0 }
  0xc2   : > { %2288 = vmatmul.msk.bf16.vlgmr.msra.gmra.mxu0 %vm325_vm1, %v313_v7  ;;  %2290 = vmatmul.msk.bf16.vlgmr.msra.gmra.mxu1 %vm325_vm1, %v313_v7 }
  0xd1   : > { %v314_v8 = vpop.trf.xlu0 }
  0xd2   : > { %2289 = vmatmul.msk.bf16.gmra.mxu0 %vm325_vm1, %v314_v8  ;;  %2291 = vmatmul.msk.bf16.gmra.mxu1 %vm325_vm1, %v314_v8 }
  0xe1   : > { %v382_v16 = vpop.trf.xlu0 }
  0xe2   : > { %2292 = vmatmul.msk.bf16.vlgmr.msra.gmra.mxu2 %vm395_vm3, %v382_v16  ;;  %2294 = vmatmul.msk.bf16.vlgmr.msra.gmra.mxu3 %vm395_vm3, %v382_v16 }
  0xf1   : > { %v383_v7 = vpop.trf.xlu0 }
  0xf2   : > { %2293 = vmatmul.msk.bf16.gmra.mxu2 %vm395_vm3, %v383_v7  ;;  %2295 = vmatmul.msk.bf16.gmra.mxu3 %vm395_vm3, %v383_v7 }
 0x13f   : > { %v346_v17 = vpop.f32.mrf.mxu0  ;;  %v364_v18 = vpop.f32.mrf.mxu1 }
 0x140   : > { %v455_v19 = vmul.f32 0.35355338, %v346_v17  ;;  %v456_v20 = vmul.f32 0.35355338, %v364_v18 }
 0x142   : > { %v457_v21 = vpack.c.bf16 %v455_v19, %v455_v19  ;;  %v458_v22 = vpack.c.bf16 %v456_v20, %v456_v20 }
 0x144   : > { %463 = vxpose.binary.xlu1.c.b16.start.end [1/2] (short) %v458_v22, %v457_v21, 128 }
 0x147   : > { %v3004_v23 = vpop.f32.mrf.mxu0  ;;  %v3006_v24 = vpop.f32.mrf.mxu1 }
 0x148   : > { %4479 = vst [vmem:[#allocation5_spill] sm:$0xff] %v3004_v23 }
 0x149   : > { %4480 = vst [vmem:[#allocation6_spill] sm:$0xff] %v3006_v24 }
 0x14f   : > { %v3008_v25 = vpop.f32.mrf.mxu0  ;;  %v3010_v26 = vpop.f32.mrf.mxu1 }
 0x150   : > { %4481 = vst [vmem:[#allocation7_spill] sm:$0xff] %v3008_v25 }
 0x151   : > { %4482 = vst [vmem:[#allocation8_spill] sm:$0xff] %v3010_v26 }
 0x157   : > { %v353_v27 = vpop.f32.mrf.mxu0  ;;  %v371_v28 = vpop.f32.mrf.mxu1 }
 0x165   : > { %v418_v29 = vpop.f32.mrf.mxu2  ;;  %v437_v30 = vpop.f32.mrf.mxu3 }
 0x166   : > { %v459_v31 = vpack.c.bf16 %v418_v29, %v418_v29  ;;  %v460_v32 = vpack.c.bf16 %v437_v30, %v437_v30 }
 0x168   : > { %v538_v33 = vsel %vm536_vm4, %v459_v31, 0  ;;  %v541_v34 = vsel %vm536_vm4, %v460_v32, 0 }
 0x169   : > { %550 = vmatpush.bf16.msrb.mxu0 %v538_v33  ;;  %639 = vmatpush.bf16.msrb.mxu1 %v541_v34 }
 0x1f0   : > { %v471_v35 = vpop.trf.xlu1 }
 0x1f1   : > { %2296 = vmatmul.msk.bf16.vlgmr.msrb.gmra.mxu0 %vm487_vm5, %v471_v35  ;;  %2312 = vmatmul.msk.bf16.vlgmr.msrb.gmra.mxu1 %vm487_vm5, %v471_v35 }
 0x1f8   : > { %v472_v36 = vpop.trf.xlu1 }
 0x200   : > { %v473_v37 = vpop.trf.xlu1 }
 0x201   : > { %2297 = vmatmul.msk.bf16.gmra.mxu0 %vm487_vm5, %v473_v37  ;;  %2313 = vmatmul.msk.bf16.gmra.mxu1 %vm487_vm5, %v473_v37 }
 0x208   : > { %v474_v38 = vpop.trf.xlu1 }
 0x210   : > { %v475_v39 = vpop.trf.xlu1 }
 0x211   : > { %2298 = vmatmul.msk.bf16.gmra.mxu0 %vm487_vm5, %v475_v39  ;;  %2314 = vmatmul.msk.bf16.gmra.mxu1 %vm487_vm5, %v475_v39 }
 0x218   : > { %v476_v40 = vpop.trf.xlu1 }
 0x220   : > { %v477_v41 = vpop.trf.xlu1 }
 0x221   : > { %2299 = vmatmul.msk.bf16.gmra.mxu0 %vm487_vm5, %v477_v41  ;;  %2315 = vmatmul.msk.bf16.gmra.mxu1 %vm487_vm5, %v477_v41 }
 0x228   : > { %v478_v42 = vpop.trf.xlu1 }
 0x230   : > { %v479_v43 = vpop.trf.xlu1 }
 0x231   : > { %2300 = vmatmul.msk.bf16.gmra.mxu0 %vm487_vm5, %v479_v43  ;;  %2316 = vmatmul.msk.bf16.gmra.mxu1 %vm487_vm5, %v479_v43 }
 0x238   : > { %v480_v44 = vpop.trf.xlu1 }
 0x240   : > { %v481_v45 = vpop.trf.xlu1 }
 0x241   : > { %2301 = vmatmul.msk.bf16.gmra.mxu0 %vm487_vm5, %v481_v45  ;;  %2317 = vmatmul.msk.bf16.gmra.mxu1 %vm487_vm5, %v481_v45 }
 0x248   : > { %v482_v46 = vpop.trf.xlu1 }
 0x250   : > { %v483_v47 = vpop.trf.xlu1 }
 0x251   : > { %2302 = vmatmul.msk.bf16.gmra.mxu0 %vm487_vm5, %v483_v47  ;;  %2318 = vmatmul.msk.bf16.gmra.mxu1 %vm487_vm5, %v483_v47 }
 0x258   : > { %v484_v48 = vpop.trf.xlu1 }
 0x260   : > { %v485_v49 = vpop.trf.xlu1 }
 0x261   : > { %2303 = vmatmul.msk.bf16.gmra.mxu0 %vm487_vm5, %v485_v49  ;;  %2319 = vmatmul.msk.bf16.gmra.mxu1 %vm487_vm5, %v485_v49 }
 0x268   : > { %v486_v18 = vpop.trf.xlu1 }
 0x26e   : > { %v3030_v50 = vpop.f32.mrf.mxu0  ;;  %v3032_v51 = vpop.f32.mrf.mxu1 }
 0x26f   : > { %v721_v52 = vmax.f32 %v3030_v50, %v3032_v51 }
 0x271   : > { %2304 = vmatmul.msk.bf16.gmra.mxu0 %vm487_vm5, %v472_v36  ;;  %2320 = vmatmul.msk.bf16.gmra.mxu1 %vm487_vm5, %v472_v36 }
 0x272   : > { %722 = vmax.xlane.f32.xlu0 %v721_v52 }
 0x276   : > { %v3038_v53 = vpop.f32.mrf.mxu0  ;;  %v3040_v54 = vpop.f32.mrf.mxu1 }
 0x277   : > { %4483 = vst [vmem:[#allocation9_spill] sm:$0xff] %v3038_v53 }
 0x278   : > { %4484 = vst [vmem:[#allocation10_spill] sm:$0xff] %v3040_v54 }
 0x27e   : > { %v3042_v55 = vpop.f32.mrf.mxu0  ;;  %v3044_v56 = vpop.f32.mrf.mxu1 }
 0x27f   : > { %4485 = vst [vmem:[#allocation11_spill] sm:$0xff] %v3044_v56  ;;  %v727_v7 = vmax.f32 %v3042_v55, %v3044_v56 }
 0x281   : > { %2305 = vmatmul.msk.bf16.gmra.mxu0 %vm487_vm5, %v474_v38  ;;  %2321 = vmatmul.msk.bf16.gmra.mxu1 %vm487_vm5, %v474_v38 }
 0x286   : > { %v3048_v57 = vpop.f32.mrf.mxu0  ;;  %v3050_v58 = vpop.f32.mrf.mxu1 }
 0x28e   : > { %v3052_v59 = vpop.f32.mrf.mxu0  ;;  %v3054_v60 = vpop.f32.mrf.mxu1 }
 0x28f   : > { %v733_v45 = vmax.f32 %v3052_v59, %v3054_v60 }
 0x291   : > { %2306 = vmatmul.msk.bf16.gmra.mxu0 %vm487_vm5, %v476_v40  ;;  %2322 = vmatmul.msk.bf16.gmra.mxu1 %vm487_vm5, %v476_v40 }
 0x296   : > { %v3058_v61 = vpop.f32.mrf.mxu0  ;;  %v3060_v62 = vpop.f32.mrf.mxu1 }
 0x29e   : > { %v3062_v63 = vpop.f32.mrf.mxu0  ;;  %v3064_v0 = vpop.f32.mrf.mxu1 }
 0x29f   : > { %v739_v38 = vmax.f32 %v3062_v63, %v3064_v0 }
 0x2a1   : > { %2307 = vmatmul.msk.bf16.gmra.mxu0 %vm487_vm5, %v478_v42  ;;  %2323 = vmatmul.msk.bf16.gmra.mxu1 %vm487_vm5, %v478_v42 }
 0x2a6   : > { %v3068_v1 = vpop.f32.mrf.mxu0  ;;  %v3070_v2 = vpop.f32.mrf.mxu1 }
 0x2a7   : > { %v742_v41 = vmax.f32 %v3068_v1, %v3070_v2 }
 0x2ae   : > { %v3072_v3 = vpop.f32.mrf.mxu0  ;;  %v3074_v4 = vpop.f32.mrf.mxu1 }
 0x2af   : > { %v745_v32 = vmax.f32 %v3072_v3, %v3074_v4 }
 0x2b1   : > { %2308 = vmatmul.msk.bf16.gmra.mxu0 %vm487_vm5, %v480_v44  ;;  %2324 = vmatmul.msk.bf16.gmra.mxu1 %vm487_vm5, %v480_v44 }
 0x2b6   : > { %v3078_v5 = vpop.f32.mrf.mxu0  ;;  %v3080_v6 = vpop.f32.mrf.mxu1 }
 0x2b7   : > { %v748_v35 = vmax.f32 %v3078_v5, %v3080_v6 }
 0x2be   : > { %v3084_v8 = vpop.f32.mrf.mxu0  ;;  %v3086_v9 = vpop.f32.mrf.mxu1 }
 0x2bf   : > { %v751_v22 = vmax.f32 %v3084_v8, %v3086_v9 }
 0x2c1   : > { %2309 = vmatmul.msk.bf16.gmra.mxu0 %vm487_vm5, %v482_v46  ;;  %2325 = vmatmul.msk.bf16.gmra.mxu1 %vm487_vm5, %v482_v46 }
 0x2c6   : > { %v3090_v10 = vpop.f32.mrf.mxu0  ;;  %v3092_v11 = vpop.f32.mrf.mxu1 }
 0x2c7   : > { %v754_v29 = vmax.f32 %v3090_v10, %v3092_v11 }
 0x2ce   : > { %v3094_v12 = vpop.f32.mrf.mxu0  ;;  %v3096_v13 = vpop.f32.mrf.mxu1 }
 0x2cf   : > { %v757_v14 = vmax.f32 %v3094_v12, %v3096_v13 }
 0x2d1   : > { %2310 = vmatmul.msk.bf16.gmra.mxu0 %vm487_vm5, %v484_v48  ;;  %2326 = vmatmul.msk.bf16.gmra.mxu1 %vm487_vm5, %v484_v48  ;;  %v736_v48 = vmax.f32 %v3058_v61, %v3060_v62 }
 0x2d2   : > { %758 = vmax.xlane.f32.xlu2 %v757_v14 }
 0x2d6   : > { %v3102_v15 = vpop.f32.mrf.mxu0  ;;  %v3104_v16 = vpop.f32.mrf.mxu1 }
 0x2d7   : > { %v760_v17 = vmax.f32 %v3102_v15, %v3104_v16 }
 0x2da   : > { %761 = vmax.xlane.f32.xlu2 %v760_v17 }
 0x2de   : > { %v3108_v19 = vpop.f32.mrf.mxu0  ;;  %v3110_v20 = vpop.f32.mrf.mxu1 }
 0x2df   : > { %v763_v21 = vmax.f32 %v3108_v19, %v3110_v20 }
 0x2e1   : > { %2311 = vmatmul.msk.bf16.gmra.mxu0 %vm487_vm5, %v486_v18  ;;  %2327 = vmatmul.msk.bf16.gmra.mxu1 %vm487_vm5, %v486_v18  ;;  %v730_v18 = vmax.f32 %v3048_v57, %v3050_v58 }
 0x2e2   : > { %752 = vmax.xlane.f32.xlu2 %v751_v22  ;;  %764 = vmax.xlane.f32.xlu1 %v763_v21 }
 0x2e6   : > { %v3118_v27 = vpop.f32.mrf.mxu0  ;;  %v3120_v28 = vpop.f32.mrf.mxu1 }
 0x2ea   : > { %755 = vmax.xlane.f32.xlu2 %v754_v29  ;;  %v724_v29 = vmax.f32 %v3038_v53, %v3040_v54 }
 0x2ee   : > { %v3124_v30 = vpop.f32.mrf.mxu0  ;;  %v3126_v31 = vpop.f32.mrf.mxu1 }
 0x2f2   : > { %746 = vmax.xlane.f32.xlu2 %v745_v32 }
 0x2f6   : > { %v3130_v33 = vpop.f32.mrf.mxu0  ;;  %v3132_v34 = vpop.f32.mrf.mxu1 }
 0x2fa   : > { %749 = vmax.xlane.f32.xlu2 %v748_v35 }
 0x2fe   : > { %v3136_v36 = vpop.f32.mrf.mxu0  ;;  %v3138_v37 = vpop.f32.mrf.mxu1 }
 0x302   : > { %740 = vmax.xlane.f32.xlu2 %v739_v38  ;;  %v766_v38 = vmax.f32 %v3118_v27, %v3120_v28 }
 0x306   : > { %v3142_v39 = vpop.f32.mrf.mxu0  ;;  %v3144_v40 = vpop.f32.mrf.mxu1 }
 0x30a   : > { %743 = vmax.xlane.f32.xlu2 %v742_v41 }
 0x30e   : > { %v3148_v42 = vpop.f32.mrf.mxu0  ;;  %v3150_v43 = vpop.f32.mrf.mxu1 }
 0x30f   : > { %4486 = vst [vmem:[#allocation12_spill] sm:$0xff] %v3148_v42  ;;  %v781_v44 = vmax.f32 %v3148_v42, %v3150_v43 }
 0x310   : > { %4487 = vst [vmem:[#allocation13_spill] sm:$0xff] %v3150_v43 }
 0x311   : > { %782 = vmax.xlane.f32.xlu0 %v781_v44 }
 0x312   : > { %734 = vmax.xlane.f32.xlu2 %v733_v45 }
 0x316   : > { %v3156_v46 = vpop.f32.mrf.mxu0  ;;  %v3158_v47 = vpop.f32.mrf.mxu1 }
 0x31a   : > { %737 = vmax.xlane.f32.xlu2 %v736_v48 }
 0x31e   : > { %v3162_v49 = vpop.f32.mrf.mxu0  ;;  %v3164_v52 = vpop.f32.mrf.mxu1 }
 0x31f   : > { %4488 = vst [vmem:[#allocation14_spill] sm:$0xff] %v3162_v49  ;;  %v787_v45 = vmax.f32 %v3162_v49, %v3164_v52 }
 0x320   : > { %4489 = vst [vmem:[#allocation15_spill] sm:$0xff] %v3164_v52 }
 0x322   : > { %728 = vmax.xlane.f32.xlu2 %v727_v7 }
 0x326   : > { %v3168_v14 = vpop.f32.mrf.mxu0  ;;  %v3170_v17 = vpop.f32.mrf.mxu1 }
 0x327   : > { %4490 = vst [vmem:[#allocation16_spill] sm:$0xff] %v3168_v14 }
 0x328   : > { %4491 = vst [vmem:[#allocation17_spill] sm:$0xff] %v3170_v17 }
 0x32a   : > { %731 = vmax.xlane.f32.xlu2 %v730_v18 }
 0x32e   : > { %v3174_v21 = vpop.f32.mrf.mxu0  ;;  %v3176_v22 = vpop.f32.mrf.mxu1 }
 0x32f   : > { %v793_v24 = vmax.f32 %v3174_v21, %v3176_v22 }
 0x332   : > { %725 = vmax.xlane.f32.xlu2 %v724_v29  ;;  %v790_v29 = vmax.f32 %v3168_v14, %v3170_v17 }
 0x336   : > { %v3180_v32 = vpop.f32.mrf.mxu0  ;;  %v3182_v35 = vpop.f32.mrf.mxu1 }
 0x33a   : > { %767 = vmax.xlane.f32.xlu2 %v766_v38 }
 0x33e   : > { %v3186_v41 = vpop.f32.mrf.mxu0  ;;  %v3188_v44 = vpop.f32.mrf.mxu1 }
 0x342   : > { %788 = vmax.xlane.f32.xlu2 %v787_v45 }
 0x345   : > { %v759_v48 = vpop.xlane.xlu2 %758 }
 0x346   : > { %v3192_v7 = vpop.f32.mrf.mxu0  ;;  %v3194_v18 = vpop.f32.mrf.mxu1  ;;  %v841_v52 = vsub.f32 %v3094_v12, %v759_v48  ;;  %v842_v49 = vsub.f32 %v3096_v13, %v759_v48  ;;  %v799_v12 = vmax.f32 %v3186_v41, %v3188_v44 }
 0x348   : > { %v931_v13 = vmul.f32 1.442695, %v842_v49 }
 0x34a   : > { %791 = vmax.xlane.f32.xlu2 %v790_v29  ;;  %v796_v29 = vmax.f32 %v3180_v32, %v3182_v35 }
 0x34d   : > { %v3198_v26 = vpop.xlane.xlu2 %761 }
 0x34e   : > { %v3200_v38 = vpop.f32.mrf.mxu0  ;;  %v3202_v25 = vpop.f32.mrf.mxu1 }
 0x352   : > { %794 = vmax.xlane.f32.xlu2 %v793_v24 }
 0x355   : > { %v753_v45 = vpop.xlane.xlu2 %752  ;;  %v765_v23 = vpop.xlane.xlu1 %764 }
 0x356   : > { %v845_v43 = vsub.f32 %v3108_v19, %v765_v23  ;;  %v846_v42 = vsub.f32 %v3110_v20, %v765_v23  ;;  %v3208_v54 = vpop.f32.mrf.mxu0  ;;  %v3210_v17 = vpop.f32.mrf.mxu1 }
 0x358   : > { %v937_v14 = vmul.f32 1.442695, %v845_v43  ;;  %v939_v53 = vmul.f32 1.442695, %v846_v42 }
 0x35a   : > { %797 = vmax.xlane.f32.xlu2 %v796_v29  ;;  %2433 = vpow2.f32 %v937_v14  ;;  %v929_v14 = vmul.f32 1.442695, %v841_v52  ;;  %v802_v52 = vmax.f32 %v3192_v7, %v3194_v18 }
 0x35b   : > { %2435 = vpow2.f32 %v939_v53 }
 0x35d   : > { %v756_v24 = vpop.xlane.xlu2 %755 }
 0x35e   : > { %v839_v19 = vsub.f32 %v3090_v10, %v756_v24  ;;  %v840_v23 = vsub.f32 %v3092_v11, %v756_v24  ;;  %v3218_v20 = vpop.f32.mrf.mxu0  ;;  %v3220_v56 = vpop.f32.mrf.mxu1 }
 0x35f   : > { %v811_v43 = vmax.f32 %v3218_v20, %v3220_v56 }
 0x360   : > { %v925_v42 = vmul.f32 1.442695, %v839_v19  ;;  %v927_v29 = vmul.f32 1.442695, %v840_v23  ;;  %v3226_v53 = vpop.eup %2433 }
 0x361   : > { %812 = vmax.xlane.f32.xlu0 %v811_v43  ;;  %v3228_v10 = vpop.eup %2435 }
 0x362   : > { %2437 = vpow2.f32 %v925_v42  ;;  %800 = vmax.xlane.f32.xlu2 %v799_v12  ;;  %4492 = vst [vmem:[#allocation18_spill] sm:$0xff] %v3228_v10  ;;  %v1051_v48 = vadd.f32 %v3228_v10, %v3226_v53  ;;  %v837_v42 = vsub.f32 %v3084_v8, %v753_v45  ;;  %v838_v12 = vsub.f32 %v3086_v9, %v753_v45 }
 0x363   : > { %2439 = vpow2.f32 %v927_v29  ;;  %v769_v8 = vmax.f32 %v3124_v30, %v3126_v31 }
 0x364   : > { %2441 = vpow2.f32 %v929_v14 }
 0x365   : > { %v747_v11 = vpop.xlane.xlu2 %746  ;;  %2443 = vpow2.f32 %v931_v13 }
 0x366   : > { %v834_v9 = vsub.f32 %v3074_v4, %v747_v11 }
 0x368   : > { %v3232_v24 = vpop.eup %2437 }
 0x369   : > { %4493 = vst [vmem:[#allocation19_spill] sm:$0xff] %v3232_v24  ;;  %v3236_v19 = vpop.eup %2439  ;;  %1052 = vadd.xlane.f32.xlu0 %v1051_v48 }
 0x36a   : > { %4494 = vst [vmem:[#allocation20_spill] sm:$0xff] %v3236_v19  ;;  %803 = vmax.xlane.f32.xlu2 %v802_v52  ;;  %v1042_v49 = vadd.f32 %v3236_v19, %v3232_v24  ;;  %v3240_v23 = vpop.eup %2441  ;;  %v805_v19 = vmax.f32 %v3200_v38, %v3202_v25  ;;  %v921_v24 = vmul.f32 1.442695, %v837_v42 }
 0x36b   : > { %4495 = vst [vmem:[#allocation21_spill] sm:$0xff] %v3240_v23  ;;  %v3242_v43 = vpop.eup %2443 }
 0x36c   : > { %4496 = vst [vmem:[#allocation22_spill] sm:$0xff] %v3242_v43  ;;  %1043 = vadd.xlane.f32.xlu1 %v1042_v49  ;;  %v1045_v48 = vadd.f32 %v3242_v43, %v3240_v23  ;;  %v923_v49 = vmul.f32 1.442695, %v838_v12 }
 0x36d   : > { %v750_v29 = vpop.xlane.xlu2 %749 }
 0x36e   : > { %v835_v14 = vsub.f32 %v3078_v5, %v750_v29  ;;  %v836_v13 = vsub.f32 %v3080_v6, %v750_v29  ;;  %v833_v5 = vsub.f32 %v3072_v3, %v747_v11  ;;  %v775_v29 = vmax.f32 %v3136_v36, %v3138_v37  ;;  %v3272_v11 = vpop.f32.mrf.mxu0 }
 0x370   : > { %v917_v52 = vmul.f32 1.442695, %v835_v14  ;;  %v919_v10 = vmul.f32 1.442695, %v836_v13  ;;  %v913_v3 = vmul.f32 1.442695, %v833_v5 }
 0x371   : > { %1046 = vadd.xlane.f32.xlu0 %v1045_v48  ;;  %v915_v13 = vmul.f32 1.442695, %v834_v9  ;;  %v3274_v48 = vpop.f32.mrf.mxu1 }
 0x372   : > { %2445 = vpow2.f32 %v917_v52  ;;  %806 = vmax.xlane.f32.xlu2 %v805_v19  ;;  %v814_v9 = vmax.f32 %v3272_v11, %v3274_v48 }
 0x373   : > { %2447 = vpow2.f32 %v919_v10  ;;  %v808_v10 = vmax.f32 %v3208_v54, %v3210_v17 }
 0x374   : > { %770 = vmax.xlane.f32.xlu1 %v769_v8  ;;  %2449 = vpow2.f32 %v921_v24  ;;  %v844_v8 = vsub.f32 %v3104_v16, %v3198_v26 }
 0x375   : > { %v741_v6 = vpop.xlane.xlu2 %740  ;;  %2451 = vpow2.f32 %v923_v49  ;;  %v843_v49 = vsub.f32 %v3102_v15, %v3198_v26 }
 0x376   : > { %v829_v45 = vsub.f32 %v3062_v63, %v741_v6  ;;  %v830_v42 = vsub.f32 %v3064_v0, %v741_v6 }
 0x378   : > { %v3260_v19 = vpop.eup %2445  ;;  %v905_v12 = vmul.f32 1.442695, %v829_v45  ;;  %v907_v14 = vmul.f32 1.442695, %v830_v42  ;;  %v933_v42 = vmul.f32 1.442695, %v843_v49 }
 0x379   : > { %4497 = vst [vmem:[#allocation23_spill] sm:$0xff] %v3260_v19  ;;  %v3264_v24 = vpop.eup %2447  ;;  %776 = vmax.xlane.f32.xlu0 %v775_v29 }
 0x37a   : > { %4498 = vst [vmem:[#allocation24_spill] sm:$0xff] %v3264_v24  ;;  %2453 = vpow2.f32 %v905_v12  ;;  %809 = vmax.xlane.f32.xlu2 %v808_v10  ;;  %v1036_v63 = vadd.f32 %v3264_v24, %v3260_v19  ;;  %v3268_v0 = vpop.eup %2449  ;;  %v935_v12 = vmul.f32 1.442695, %v844_v8  ;;  %v784_v10 = vmax.f32 %v3156_v46, %v3158_v47 }
 0x37b   : > { %4499 = vst [vmem:[#allocation25_spill] sm:$0xff] %v3268_v0  ;;  %2455 = vpow2.f32 %v907_v14  ;;  %v3270_v4 = vpop.eup %2451 }
 0x37c   : > { %4500 = vst [vmem:[#allocation26_spill] sm:$0xff] %v3270_v4  ;;  %1037 = vadd.xlane.f32.xlu1 %v1036_v63  ;;  %2457 = vpow2.f32 %v913_v3  ;;  %v1039_v5 = vadd.f32 %v3270_v4, %v3268_v0 }
 0x37d   : > { %v3276_v52 = vpop.xlane.xlu2 %743  ;;  %2459 = vpow2.f32 %v915_v13 }
 0x37e   : > { %2461 = vpow2.f32 %v933_v42  ;;  %v772_v42 = vmax.f32 %v3130_v33, %v3132_v34 }
 0x37f   : > { %2463 = vpow2.f32 %v935_v12 }
 0x380   : > { %v3284_v6 = vpop.eup %2453 }
 0x381   : > { %4501 = vst [vmem:[#allocation27_spill] sm:$0xff] %v3284_v6  ;;  %v3288_v45 = vpop.eup %2455  ;;  %1040 = vadd.xlane.f32.xlu0 %v1039_v5  ;;  %v778_v5 = vmax.f32 %v3142_v39, %v3144_v40 }
 0x382   : > { %4502 = vst [vmem:[#allocation28_spill] sm:$0xff] %v3288_v45  ;;  %815 = vmax.xlane.f32.xlu2 %v814_v9  ;;  %v1027_v15 = vadd.f32 %v3288_v45, %v3284_v6  ;;  %v3292_v29 = vpop.eup %2457 }
 0x383   : > { %4503 = vst [vmem:[#allocation29_spill] sm:$0xff] %v3292_v29  ;;  %v3294_v26 = vpop.eup %2459 }
 0x384   : > { %4504 = vst [vmem:[#allocation30_spill] sm:$0xff] %v3294_v26  ;;  %1028 = vadd.xlane.f32.xlu1 %v1027_v15  ;;  %v1033_v14 = vadd.f32 %v3294_v26, %v3292_v29  ;;  %v3302_v3 = vpop.eup %2461 }
 0x385   : > { %v3296_v16 = vpop.xlane.xlu2 %734  ;;  %4505 = vst [vmem:[#allocation31_spill] sm:$0xff] %v3302_v3  ;;  %v3304_v13 = vpop.eup %2463 }
 0x386   : > { %4506 = vst [vmem:[#allocation32_spill] sm:$0xff] %v3304_v13  ;;  %v1048_v49 = vadd.f32 %v3304_v13, %v3302_v3 }
 0x389   : > { %1034 = vadd.xlane.f32.xlu0 %v1033_v14 }
 0x38a   : > { %785 = vmax.xlane.f32.xlu2 %v784_v10 }
 0x38d   : > { %v3306_v63 = vpop.xlane.xlu2 %737 }
 0x392   : > { %1049 = vadd.xlane.f32.xlu2 %v1048_v49 }
 0x395   : > { %v3310_v8 = vpop.xlane.xlu2 %728 }
 0x39a   : > { %779 = vmax.xlane.f32.xlu2 %v778_v5 }
 0x39d   : > { %v732_v9 = vpop.xlane.xlu2 %731 }
 0x3a2   : > { %773 = vmax.xlane.f32.xlu2 %v772_v42 }
 0x3a5   : > { %v3316_v15 = vpop.xlane.xlu2 %725 }
 0x3ad   : > { %v768_v12 = vpop.xlane.xlu2 %767 }
 0x3ae   : > { %v847_v14 = vsub.f32 %v3118_v27, %v768_v12  ;;  %v848_v10 = vsub.f32 %v3120_v28, %v768_v12  ;;  %v723_v28 = vpop.xlane.xlu0 %722 }
 0x3b0   : > { %v941_v45 = vmul.f32 1.442695, %v847_v14  ;;  %v943_v49 = vmul.f32 1.442695, %v848_v10 }
 0x3b2   : > { %2465 = vpow2.f32 %v941_v45 }
 0x3b3   : > { %2467 = vpow2.f32 %v943_v49 }
 0x3b5   : > { %v3320_v6 = vpop.xlane.xlu2 %788 }
 0x3b6   : > { %v3334_v45 = vpop.xlane.xlu0 %782 }
 0x3b8   : > { %v3322_v24 = vpop.eup %2465 }
 0x3b9   : > { %4507 = vst [vmem:[#allocation33_spill] sm:$0xff] %v3322_v24  ;;  %v3324_v5 = vpop.eup %2467 }
 0x3ba   : > { %4508 = vst [vmem:[#allocation34_spill] sm:$0xff] %v3324_v5  ;;  %v1054_v42 = vadd.f32 %v3324_v5, %v3322_v24  ;;  %v823_v5 = vsub.f32 %v3048_v57, %v732_v9 }
 0x3bc   : > { %1055 = vadd.xlane.f32.xlu2 %v1054_v42 }
 0x3bd   : > { %v3328_v19 = vpop.xlane.xlu2 %791 }
 0x3c5   : > { %v795_v26 = vpop.xlane.xlu2 %794 }
 0x3c6   : > { %v865_v29 = vsub.f32 %v3174_v21, %v795_v26  ;;  %v866_v42 = vsub.f32 %v3176_v22, %v795_v26  ;;  %v893_v26 = vmul.f32 1.442695, %v823_v5  ;;  %v831_v5 = vsub.f32 %v3068_v1, %v3276_v52 }
 0x3c8   : > { %v977_v43 = vmul.f32 1.442695, %v865_v29  ;;  %v979_v23 = vmul.f32 1.442695, %v866_v42 }
 0x3cd   : > { %v3330_v27 = vpop.xlane.xlu2 %797 }
 0x3d4   : > { %v813_v13 = vpop.xlane.xlu0 %812 }
 0x3d5   : > { %v3332_v12 = vpop.xlane.xlu2 %800  ;;  %v877_v21 = vsub.f32 %v3218_v20, %v813_v13  ;;  %v878_v29 = vsub.f32 %v3220_v56, %v813_v13  ;;  %v817_v20 = vsub.f32 %v3030_v50, %v723_v28  ;;  %v818_v13 = vsub.f32 %v3032_v51, %v723_v28 }
 0x3d6   : > { %v832_v50 = vsub.f32 %v3070_v2, %v3276_v52 }
 0x3d7   : > { %v883_v28 = vmul.f32 1.442695, %v818_v13 }
 0x3d8   : > { %v911_v2 = vmul.f32 1.442695, %v832_v50 }
 0x3dd   : > { %v804_v14 = vpop.xlane.xlu2 %803 }
 0x3de   : > { %v871_v10 = vsub.f32 %v3192_v7, %v804_v14  ;;  %v872_v49 = vsub.f32 %v3194_v18, %v804_v14  ;;  %v824_v18 = vsub.f32 %v3050_v58, %v732_v9  ;;  %v1001_v58 = vmul.f32 1.442695, %v877_v21 }
 0x3e0   : > { %v989_v4 = vmul.f32 1.442695, %v871_v10  ;;  %v991_v0 = vmul.f32 1.442695, %v872_v49 }
 0x3e2   : > { %2469 = vpow2.f32 %v989_v4 }
 0x3e3   : > { %2471 = vpow2.f32 %v991_v0 }
 0x3e4   : > { %2473 = vpow2.f32 %v977_v43 }
 0x3e5   : > { %v807_v3 = vpop.xlane.xlu2 %806  ;;  %2475 = vpow2.f32 %v979_v23 }
 0x3e6   : > { %v873_v24 = vsub.f32 %v3200_v38, %v807_v3  ;;  %v874_v7 = vsub.f32 %v3202_v25, %v807_v3  ;;  %v895_v25 = vmul.f32 1.442695, %v824_v18  ;;  %v1003_v38 = vmul.f32 1.442695, %v878_v29 }
 0x3e7   : > { %v909_v18 = vmul.f32 1.442695, %v831_v5 }
 0x3e8   : > { %v3344_v14 = vpop.eup %2469  ;;  %v993_v22 = vmul.f32 1.442695, %v873_v24  ;;  %v995_v4 = vmul.f32 1.442695, %v874_v7  ;;  %v3372_v7 = vpop.xlane.xlu1 %1043 }
 0x3e9   : > { %v3347_v0 = vpop.eup %2471 }
 0x3ea   : > { %2477 = vpow2.f32 %v993_v22  ;;  %v1090_v57 = vadd.f32 %v3347_v0, %v3344_v14  ;;  %v3352_v3 = vpop.eup %2473 }
 0x3eb   : > { %2479 = vpow2.f32 %v995_v4  ;;  %v3357_v24 = vpop.eup %2475  ;;  %v825_v4 = vsub.f32 %v3052_v59, %v3296_v16  ;;  %v870_v59 = vsub.f32 %v3188_v44, %v3332_v12  ;;  %v827_v44 = vsub.f32 %v3058_v61, %v3306_v63 }
 0x3ec   : > { %1091 = vadd.xlane.f32.xlu1 %v1090_v57  ;;  %2481 = vpow2.f32 %v893_v26  ;;  %v1081_v51 = vadd.f32 %v3357_v24, %v3352_v3  ;;  %v867_v61 = vsub.f32 %v3180_v32, %v3330_v27  ;;  %v868_v32 = vsub.f32 %v3182_v35, %v3330_v27 }
 0x3ed   : > { %v810_v43 = vpop.xlane.xlu2 %809  ;;  %2483 = vpow2.f32 %v895_v25  ;;  %v826_v25 = vsub.f32 %v3054_v60, %v3296_v16 }
 0x3ee   : > { %v875_v23 = vsub.f32 %v3208_v54, %v810_v43  ;;  %v876_v56 = vsub.f32 %v3210_v17, %v810_v43  ;;  %2485 = vpow2.f32 %v1001_v58  ;;  %v881_v54 = vmul.f32 1.442695, %v817_v20 }
 0x3ef   : > { %2487 = vpow2.f32 %v1003_v38  ;;  %v869_v38 = vsub.f32 %v3186_v41, %v3332_v12  ;;  %v899_v16 = vmul.f32 1.442695, %v826_v25  ;;  %v987_v12 = vmul.f32 1.442695, %v870_v59 }
 0x3f0   : > { %v3360_v9 = vpop.eup %2477  ;;  %v997_v10 = vmul.f32 1.442695, %v875_v23  ;;  %v999_v49 = vmul.f32 1.442695, %v876_v56  ;;  %v981_v25 = vmul.f32 1.442695, %v867_v61 }
 0x3f1   : > { %v3364_v42 = vpop.eup %2479  ;;  %v985_v13 = vmul.f32 1.442695, %v869_v38  ;;  %v983_v59 = vmul.f32 1.442695, %v868_v32  ;;  %v4514_v32 = vld [vmem:[#allocation9_spill] sm:$0xff] }
 0x3f2   : > { %2489 = vpow2.f32 %v997_v10  ;;  %v1093_v17 = vadd.f32 %v3364_v42, %v3360_v9  ;;  %v3374_v1 = vpop.eup %2481  ;;  %v771_v10 = vpop.xlane.xlu1 %770 }
 0x3f3   : > { %2491 = vpow2.f32 %v999_v49  ;;  %v3376_v21 = vpop.eup %2483 }
 0x3f4   : > { %1082 = vadd.xlane.f32.xlu1 %v1081_v51  ;;  %1094 = vadd.xlane.f32.xlu2 %v1093_v17  ;;  %v3378_v22 = vpop.eup %2485  ;;  %2493 = vpow2.f32 %v881_v54  ;;  %v828_v54 = vsub.f32 %v3060_v62, %v3306_v63  ;;  %v901_v62 = vmul.f32 1.442695, %v827_v44  ;;  %v4510_v44 = vld [vmem:[#allocation14_spill] sm:$0xff] }
 0x3f5   : > { %v816_v52 = vpop.xlane.xlu2 %815  ;;  %v3384_v57 = vpop.eup %2487  ;;  %2495 = vpow2.f32 %v883_v28 }
 0x3f6   : > { %v879_v29 = vsub.f32 %v3272_v11, %v816_v52  ;;  %v880_v26 = vsub.f32 %v3274_v48, %v816_v52  ;;  %2497 = vpow2.f32 %v909_v18  ;;  %v897_v11 = vmul.f32 1.442695, %v825_v4 }
 0x3f7   : > { %2499 = vpow2.f32 %v911_v2  ;;  %v1018_v48 = vadd.f32 %v3376_v21, %v3374_v1  ;;  %v1099_v41 = vadd.f32 %v3384_v57, %v3378_v22  ;;  %v849_v2 = vsub.f32 %v3124_v30, %v771_v10 }
 0x3f8   : > { %v3388_v58 = vpop.eup %2489  ;;  %v1005_v43 = vmul.f32 1.442695, %v879_v29  ;;  %v1007_v20 = vmul.f32 1.442695, %v880_v26  ;;  %v903_v63 = vmul.f32 1.442695, %v828_v54  ;;  %v3428_v26 = vpop.xlane.xlu0 %1052 }
 0x3f9   : > { %v3392_v23 = vpop.eup %2491 }
 0x3fa   : > { %2501 = vpow2.f32 %v1005_v43  ;;  %v1096_v60 = vadd.f32 %v3392_v23, %v3388_v58  ;;  %v3402_v56 = vpop.eup %2493 }
 0x3fb   : > { %2503 = vpow2.f32 %v1007_v20  ;;  %v3404_v5 = vpop.eup %2495 }
 0x3fc   : > { %1019 = vadd.xlane.f32.xlu1 %v1018_v48  ;;  %1097 = vadd.xlane.f32.xlu0 %v1096_v60  ;;  %v3408_v50 = vpop.eup %2497  ;;  %2505 = vpow2.f32 %v897_v11  ;;  %v821_v48 = vsub.f32 %v3042_v55, %v3310_v8 }
 0x3fd   : > { %1100 = vadd.xlane.f32.xlu2 %v1099_v41  ;;  %v786_v49 = vpop.xlane.xlu2 %785  ;;  %v3414_v28 = vpop.eup %2499  ;;  %2507 = vpow2.f32 %v899_v16  ;;  %v4509_v16 = vld [vmem:[#allocation11_spill] sm:$0xff] }
 0x3fe   : > { %v859_v51 = vsub.f32 %v3156_v46, %v786_v49  ;;  %v860_v17 = vsub.f32 %v3158_v47, %v786_v49  ;;  %2509 = vpow2.f32 %v985_v13  ;;  %v850_v46 = vsub.f32 %v3126_v31, %v771_v10  ;;  %v4511_v10 = vld [vmem:[#allocation15_spill] sm:$0xff] }
 0x3ff   : > { %2511 = vpow2.f32 %v987_v12  ;;  %v1009_v47 = vadd.f32 %v3404_v5, %v3402_v56  ;;  %v1030_v38 = vadd.f32 %v3414_v28, %v3408_v50  ;;  %v945_v31 = vmul.f32 1.442695, %v849_v2 }
 0x400   : > { %v3418_v18 = vpop.eup %2501  ;;  %v965_v52 = vmul.f32 1.442695, %v859_v51  ;;  %v967_v4 = vmul.f32 1.442695, %v860_v17  ;;  %v947_v35 = vmul.f32 1.442695, %v850_v46  ;;  %v822_v41 = vsub.f32 %v4509_v16, %v3310_v8 }
 0x401   : > { %v3421_v29 = vpop.eup %2503  ;;  %v861_v12 = vsub.f32 %v4510_v44, %v3320_v6  ;;  %v862_v49 = vsub.f32 %v4511_v10, %v3320_v6  ;;  %v889_v17 = vmul.f32 1.442695, %v821_v48  ;;  %v4517_v48 = vld [vmem:[#allocation10_spill] sm:$0xff] }
 0x402   : > { %2513 = vpow2.f32 %v965_v52  ;;  %v1102_v30 = vadd.f32 %v3421_v29, %v3418_v18  ;;  %v3434_v43 = vpop.eup %2505  ;;  %v891_v52 = vmul.f32 1.442695, %v822_v41  ;;  %v820_v16 = vsub.f32 %v4517_v48, %v3316_v15 }
 0x403   : > { %2515 = vpow2.f32 %v967_v4  ;;  %v3436_v20 = vpop.eup %2507  ;;  %v3466_v4 = vpop.xlane.xlu0 %1046 }
 0x404   : > { %1010 = vadd.xlane.f32.xlu1 %v1009_v47  ;;  %1103 = vadd.xlane.f32.xlu0 %v1102_v30  ;;  %2517 = vpow2.f32 %v901_v62  ;;  %v3438_v27 = vpop.eup %2509  ;;  %v1021_v61 = vadd.f32 %v3436_v20, %v3434_v43  ;;  %v969_v62 = vmul.f32 1.442695, %v861_v12  ;;  %v971_v47 = vmul.f32 1.442695, %v862_v49 }
 0x405   : > { %1031 = vadd.xlane.f32.xlu2 %v1030_v38  ;;  %2519 = vpow2.f32 %v903_v63  ;;  %v3440_v11 = vpop.eup %2511  ;;  %v3454_v54 = vpop.xlane.xlu2 %1049  ;;  %v819_v30 = vsub.f32 %v4514_v32, %v3316_v15  ;;  %v4515_v38 = vld [vmem:[#allocation16_spill] sm:$0xff] }
 0x406   : > { %2521 = vpow2.f32 %v981_v25  ;;  %v1087_v55 = vadd.f32 %v3440_v11, %v3438_v27 }
 0x407   : > { %2523 = vpow2.f32 %v945_v31  ;;  %v863_v31 = vsub.f32 %v4515_v38, %v3328_v19  ;;  %v885_v12 = vmul.f32 1.442695, %v819_v30  ;;  %v4519_v30 = vld [vmem:[#allocation13_spill] sm:$0xff] }
 0x408   : > { %v3444_v60 = vpop.eup %2513  ;;  %2525 = vpow2.f32 %v947_v35  ;;  %v4516_v35 = vld [vmem:[#allocation17_spill] sm:$0xff]  ;;  %v858_v38 = vsub.f32 %v4519_v30, %v3334_v45 }
 0x409   : > { %v3448_v13 = vpop.eup %2515  ;;  %2527 = vpow2.f32 %v983_v59  ;;  %v864_v59 = vsub.f32 %v4516_v35, %v3328_v19  ;;  %v973_v49 = vmul.f32 1.442695, %v863_v31 }
 0x40a   : > { %v1072_v51 = vadd.f32 %v3448_v13, %v3444_v60  ;;  %v3460_v8 = vpop.eup %2517  ;;  %2529 = vpow2.f32 %v889_v17  ;;  %v887_v17 = vmul.f32 1.442695, %v820_v16 }
 0x40b   : > { %v3464_v2 = vpop.eup %2519  ;;  %2531 = vpow2.f32 %v891_v52  ;;  %v975_v19 = vmul.f32 1.442695, %v864_v59 }
 0x40c   : > { %1088 = vadd.xlane.f32.xlu0 %v1087_v55  ;;  %1073 = vadd.xlane.f32.xlu1 %v1072_v51  ;;  %v3468_v6 = vpop.eup %2521  ;;  %2533 = vpow2.f32 %v969_v62  ;;  %v1024_v41 = vadd.f32 %v3464_v2, %v3460_v8  ;;  %v4518_v62 = vld [vmem:[#allocation12_spill] sm:$0xff] }
 0x40d   : > { %1022 = vadd.xlane.f32.xlu2 %v1021_v61  ;;  %v3470_v46 = vpop.eup %2523  ;;  %2535 = vpow2.f32 %v971_v47  ;;  %v780_v55 = vpop.xlane.xlu2 %779  ;;  %v857_v47 = vsub.f32 %v4518_v62, %v3334_v45 }
 0x40e   : > { %4512 = vst [vmem:[#allocation11_spill] sm:$0xff] %v3470_v46  ;;  %v3472_v63 = vpop.eup %2525  ;;  %v777_v61 = vpop.xlane.xlu0 %776  ;;  %2537 = vpow2.f32 %v885_v12 }
 0x40f   : > { %4513 = vst [vmem:[#allocation14_spill] sm:$0xff] %v3472_v63  ;;  %v3476_v25 = vpop.eup %2527  ;;  %v1057_v44 = vadd.f32 %v3472_v63, %v3470_v46  ;;  %2539 = vpow2.f32 %v973_v49  ;;  %v853_v31 = vsub.f32 %v3136_v36, %v777_v61  ;;  %v854_v35 = vsub.f32 %v3138_v37, %v777_v61  ;;  %v4527_v46 = vld [vmem:[#allocation32_spill] sm:$0xff] }
 0x410   : > { %v1084_v10 = vadd.f32 %v3476_v25, %v3468_v6  ;;  %v3490_v51 = vpop.eup %2529  ;;  %2541 = vpow2.f32 %v975_v19  ;;  %v961_v48 = vmul.f32 1.442695, %v857_v47  ;;  %v855_v37 = vsub.f32 %v3142_v39, %v780_v55 }
 0x411   : > { %v3492_v15 = vpop.eup %2531  ;;  %2543 = vpow2.f32 %v887_v17  ;;  %v953_v12 = vmul.f32 1.442695, %v853_v31  ;;  %v856_v17 = vsub.f32 %v3144_v40, %v780_v55 }
 0x412   : > { %v3494_v52 = vpop.eup %2533  ;;  %v1015_v59 = vadd.f32 %v3492_v15, %v3490_v51  ;;  %2545 = vpow2.f32 %v961_v48  ;;  %v957_v30 = vmul.f32 1.442695, %v855_v37 }
 0x413   : > { %v3498_v32 = vpop.eup %2535  ;;  %v959_v31 = vmul.f32 1.442695, %v856_v17 }
 0x414   : > { %1025 = vadd.xlane.f32.xlu0 %v1024_v41  ;;  %1058 = vadd.xlane.f32.xlu1 %v1057_v44  ;;  %v1075_v16 = vadd.f32 %v3498_v32, %v3494_v52  ;;  %v963_v41 = vmul.f32 1.442695, %v858_v38  ;;  %v3508_v44 = vpop.eup %2537 }
 0x415   : > { %1085 = vadd.xlane.f32.xlu2 %v1084_v10  ;;  %v3510_v45 = vpop.eup %2539  ;;  %v955_v10 = vmul.f32 1.442695, %v854_v35  ;;  %v774_v36 = vpop.xlane.xlu2 %773 }
 0x416   : > { %v3512_v49 = vpop.eup %2541  ;;  %2547 = vpow2.f32 %v963_v41  ;;  %v851_v61 = vsub.f32 %v3130_v33, %v774_v36  ;;  %v852_v62 = vsub.f32 %v3132_v34, %v774_v36 }
 0x417   : > { %v3515_v19 = vpop.eup %2543  ;;  %2549 = vpow2.f32 %v953_v12  ;;  %v1078_v47 = vadd.f32 %v3512_v49, %v3510_v45 }
 0x418   : > { %2551 = vpow2.f32 %v955_v10  ;;  %v1012_v38 = vadd.f32 %v3515_v19, %v3508_v44  ;;  %v3524_v39 = vpop.eup %2545  ;;  %v949_v35 = vmul.f32 1.442695, %v851_v61  ;;  %v951_v55 = vmul.f32 1.442695, %v852_v62 }
 0x419   : > { %2553 = vpow2.f32 %v957_v30  ;;  %v4523_v30 = vld [vmem:[#allocation33_spill] sm:$0xff] }
 0x41a   : > { %2555 = vpow2.f32 %v959_v31  ;;  %v4524_v31 = vld [vmem:[#allocation18_spill] sm:$0xff] }
 0x41b   : > { %2557 = vpow2.f32 %v949_v35 }
 0x41c   : > { %1016 = vadd.xlane.f32.xlu0 %v1015_v59  ;;  %v3526_v40 = vpop.eup %2547  ;;  %2559 = vpow2.f32 %v951_v55  ;;  %v4525_v55 = vld [vmem:[#allocation34_spill] sm:$0xff] }
 0x41d   : > { %1076 = vadd.xlane.f32.xlu2 %v1075_v16  ;;  %v3528_v33 = vpop.eup %2549  ;;  %v1069_v59 = vadd.f32 %v3526_v40, %v3524_v39  ;;  %2561 = vrcp.f32 %v3428_v26  ;;  %v1041_v26 = vpop.xlane.xlu0 %1040 }
 0x41e   : > { %v3530_v34 = vpop.eup %2551 }
 0x41f   : > { %4520 = vst [vmem:[#allocation15_spill] sm:$0xff] %v3530_v34  ;;  %v1063_v48 = vadd.f32 %v3530_v34, %v3528_v33  ;;  %v3536_v16 = vpop.eup %2553 }
 0x420   : > { %v3538_v41 = vpop.eup %2555 }
 0x421   : > { %v3541_v12 = vpop.eup %2557  ;;  %v1066_v37 = vadd.f32 %v3538_v41, %v3536_v16 }
 0x422   : > { %4521 = vst [vmem:[#allocation9_spill] sm:$0xff] %v3541_v12  ;;  %v3543_v36 = vpop.eup %2559 }
 0x423   : > { %4522 = vst [vmem:[#allocation16_spill] sm:$0xff] %v3543_v36  ;;  %v1060_v17 = vadd.f32 %v3543_v36, %v3541_v12  ;;  %v2562_v61 = vpop.eup %2561 }
 0x424   : > { %1079 = vadd.xlane.f32.xlu0 %v1078_v47  ;;  %v1165_v47 = vmul.f32 %v2562_v61, %v3226_v53  ;;  %v1166_v35 = vmul.f32 %v2562_v61, %v4524_v31  ;;  %v4528_v53 = vld [vmem:[#allocation21_spill] sm:$0xff] }
 0x425   : > { %1013 = vadd.xlane.f32.xlu2 %v1012_v38  ;;  %v1035_v61 = vpop.xlane.xlu0 %1034 }
 0x42c   : > { %1070 = vadd.xlane.f32.xlu0 %v1069_v59 }
 0x42d   : > { %1064 = vadd.xlane.f32.xlu2 %v1063_v48 }
 0x42f   : > { %v1056_v10 = vpop.xlane.xlu2 %1055 }
 0x430   : > { %2563 = vrcp.f32 %v1056_v10 }
 0x431   : > { %2565 = vrcp.f32 %v3454_v54 }
 0x432   : > { %2567 = vrcp.f32 %v3466_v4 }
 0x433   : > { %2569 = vrcp.f32 %v1041_v26  ;;  %v4530_v26 = vld [vmem:[#allocation25_spill] sm:$0xff] }
 0x434   : > { %1067 = vadd.xlane.f32.xlu0 %v1066_v37  ;;  %v4526_v37 = vld [vmem:[#allocation31_spill] sm:$0xff]  ;;  %2571 = vrcp.f32 %v3372_v7 }
 0x435   : > { %1061 = vadd.xlane.f32.xlu2 %v1060_v17  ;;  %2573 = vrcp.f32 %v1035_v61  ;;  %v4536_v61 = vld [vmem:[#allocation23_spill] sm:$0xff] }
 0x436   : > { %v2564_v62 = vpop.eup %2563 }
 0x437   : > { %v1167_v38 = vmul.f32 %v2564_v62, %v4523_v30  ;;  %v1168_v59 = vmul.f32 %v2564_v62, %v4525_v55  ;;  %v2566_v63 = vpop.eup %2565  ;;  %v4529_v30 = vld [vmem:[#allocation22_spill] sm:$0xff] }
 0x438   : > { %v2568_v54 = vpop.eup %2567  ;;  %v1163_v17 = vmul.f32 %v2566_v63, %v4526_v37  ;;  %v1164_v4 = vmul.f32 %v2566_v63, %v4527_v46  ;;  %v4532_v46 = vld [vmem:[#allocation19_spill] sm:$0xff]  ;;  %v4533_v63 = vld [vmem:[#allocation20_spill] sm:$0xff] }
 0x439   : > { %v1215_v48 = vpack.c.bf16 %v1167_v38, %v1165_v47  ;;  %v1216_v10 = vpack.c.bf16 %v1168_v59, %v1166_v35  ;;  %v1161_v36 = vmul.f32 %v2568_v54, %v4528_v53  ;;  %v1162_v12 = vmul.f32 %v2568_v54, %v4529_v30  ;;  %v2570_v47 = vpop.eup %2569  ;;  %v1038_v38 = vpop.xlane.xlu1 %1037  ;;  %v4531_v59 = vld [vmem:[#allocation26_spill] sm:$0xff] }
 0x43a   : > { %v2572_v35 = vpop.eup %2571  ;;  %v1157_v55 = vmul.f32 %v2570_v47, %v4530_v26  ;;  %2575 = vrcp.f32 %v1038_v38 }
 0x43b   : > { %1233 = vmatpush.bf16.xpose.msrb.mxu2 %v1215_v48  ;;  %1246 = vmatpush.bf16.xpose.msrb.mxu3 %v1216_v10  ;;  %v1213_v31 = vpack.c.bf16 %v1163_v17, %v1161_v36  ;;  %v1214_v62 = vpack.c.bf16 %v1164_v4, %v1162_v12  ;;  %v1158_v48 = vmul.f32 %v2570_v47, %v4531_v59  ;;  %v2574_v53 = vpop.eup %2573  ;;  %v4534_v36 = vld [vmem:[#allocation29_spill] sm:$0xff]  ;;  %v4535_v4 = vld [vmem:[#allocation30_spill] sm:$0xff] }
 0x43c   : > { %v1159_v7 = vmul.f32 %v2572_v35, %v4532_v46  ;;  %v1160_v10 = vmul.f32 %v2572_v35, %v4533_v63  ;;  %v1153_v17 = vmul.f32 %v2574_v53, %v4534_v36  ;;  %v1154_v30 = vmul.f32 %v2574_v53, %v4535_v4  ;;  %v4538_v59 = vld [vmem:[#allocation5_spill] sm:$0xff] }
 0x43d   : > { %v1285_v35 = vmul.f32 0.35355338, %v4538_v59 }
 0x43e   : > { %v1211_v37 = vpack.c.bf16 %v1159_v7, %v1157_v55  ;;  %v1212_v54 = vpack.c.bf16 %v1160_v10, %v1158_v48  ;;  %v4539_v55 = vld [vmem:[#allocation6_spill] sm:$0xff] }
 0x43f   : > { %v1286_v48 = vmul.f32 0.35355338, %v4539_v55  ;;  %v1287_v46 = vpack.c.bf16 %v1285_v35, %v1285_v35 }
 0x440   : > { %v2576_v12 = vpop.eup %2575 }
 0x441   : > { %v1288_v7 = vpack.c.bf16 %v1286_v48, %v1286_v48  ;;  %v1029_v10 = vpop.xlane.xlu1 %1028 }
 0x442   : > { %2577 = vrcp.f32 %v1029_v10 }
 0x443   : > { %1234 = vmatpush.bf16.xpose.msrb.mxu2 %v1213_v31  ;;  %1247 = vmatpush.bf16.xpose.msrb.mxu3 %v1214_v62  ;;  %v1155_v31 = vmul.f32 %v2576_v12, %v4536_v61  ;;  %v4537_v62 = vld [vmem:[#allocation24_spill] sm:$0xff] }
 0x444   : > { %v1156_v26 = vmul.f32 %v2576_v12, %v4537_v62  ;;  %v4540_v62 = vld [vmem:[#allocation27_spill] sm:$0xff] }
 0x445   : > { %v1209_v47 = vpack.c.bf16 %v1155_v31, %v1153_v17 }
 0x446   : > { %v1210_v38 = vpack.c.bf16 %v1156_v26, %v1154_v30 }
 0x448   : > { %v2578_v17 = vpop.eup %2577 }
 0x449   : > { %v1149_v26 = vmul.f32 %v2578_v17, %v4540_v62 }
 0x44b   : > { %1235 = vmatpush.bf16.xpose.msrb.mxu2 %v1211_v37  ;;  %1248 = vmatpush.bf16.xpose.msrb.mxu3 %v1212_v54 }
 0x453   : > { %1236 = vmatpush.bf16.xpose.msrb.mxu2 %v1209_v47  ;;  %1249 = vmatpush.bf16.xpose.msrb.mxu3 %v1210_v38  ;;  %v4541_v38 = vld [vmem:[#allocation28_spill] sm:$0xff] }
 0x454   : > { %v1150_v59 = vmul.f32 %v2578_v17, %v4541_v38 }
 0x45d   : > { %1293 = vxpose.binary.xlu0.c.b16.start.end [1/2] (short) %v1288_v7, %v1287_v46, 128 }
 0x45f   : > { %v3570_v53 = vpop.xlane.xlu1 %1091 }
 0x467   : > { %v1095_v63 = vpop.xlane.xlu2 %1094  ;;  %v3574_v61 = vpop.xlane.xlu1 %1082 }
 0x46f   : > { %v1098_v37 = vpop.xlane.xlu0 %1097  ;;  %v1020_v10 = vpop.xlane.xlu1 %1019 }
 0x470   : > { %v1101_v54 = vpop.xlane.xlu2 %1100 }
 0x477   : > { %v1104_v36 = vpop.xlane.xlu0 %1103 }
 0x478   : > { %v1032_v12 = vpop.xlane.xlu2 %1031 }
 0x479   : > { %2579 = vrcp.f32 %v1032_v12 }
 0x47f   : > { %v3572_v4 = vpop.xlane.xlu0 %1088  ;;  %v2580_v30 = vpop.eup %2579 }
 0x480   : > { %v1023_v31 = vpop.xlane.xlu2 %1022  ;;  %v1151_v47 = vmul.f32 %v2580_v30, %v3408_v50  ;;  %v1152_v35 = vmul.f32 %v2580_v30, %v3414_v28 }
 0x481   : > { %2581 = vrcp.f32 %v1023_v31 }
 0x482   : > { %v1207_v55 = vpack.c.bf16 %v1151_v47, %v1149_v26  ;;  %v1208_v48 = vpack.c.bf16 %v1152_v35, %v1150_v59  ;;  %v1011_v59 = vpop.xlane.xlu1 %1010 }
 0x484   : > { %1237 = vmatpush.bf16.xpose.msrb.mxu2 %v1207_v55  ;;  %1250 = vmatpush.bf16.xpose.msrb.mxu3 %v1208_v48 }
 0x487   : > { %v1026_v46 = vpop.xlane.xlu0 %1025  ;;  %v2582_v12 = vpop.eup %2581 }
 0x488   : > { %2583 = vrcp.f32 %v1026_v46  ;;  %v3580_v7 = vpop.xlane.xlu2 %1085  ;;  %v1145_v50 = vmul.f32 %v2582_v12, %v3434_v43  ;;  %v1146_v28 = vmul.f32 %v2582_v12, %v3436_v20 }
 0x489   : > { %2585 = vrcp.f32 %v1020_v10 }
 0x48e   : > { %v2584_v34 = vpop.eup %2583 }
 0x48f   : > { %v1017_v62 = vpop.xlane.xlu0 %1016  ;;  %v1147_v17 = vmul.f32 %v2584_v34, %v3460_v8  ;;  %v1148_v30 = vmul.f32 %v2584_v34, %v3464_v2  ;;  %v2586_v38 = vpop.eup %2585 }
 0x490   : > { %2587 = vrcp.f32 %v1017_v62  ;;  %v3586_v26 = vpop.xlane.xlu2 %1076  ;;  %v1143_v55 = vmul.f32 %v2586_v38, %v3374_v1  ;;  %v1144_v8 = vmul.f32 %v2586_v38, %v3376_v21  ;;  %v3596_v21 = vpop.f32.mrf.mxu3 }
 0x491   : > { %v1205_v31 = vpack.c.bf16 %v1147_v17, %v1145_v50  ;;  %v1206_v47 = vpack.c.bf16 %v1148_v30, %v1146_v28  ;;  %2589 = vrcp.f32 %v1104_v36 }
 0x492   : > { %2591 = vrcp.f32 %v1011_v59 }
 0x493   : > { %1238 = vmatpush.bf16.xpose.msrb.mxu2 %v1205_v31  ;;  %1251 = vmatpush.bf16.xpose.msrb.mxu3 %v1206_v47  ;;  %2593 = vrcp.f32 %v1101_v54 }
 0x496   : > { %v2588_v35 = vpop.eup %2587 }
 0x497   : > { %v1141_v43 = vmul.f32 %v2588_v35, %v3490_v51  ;;  %v1142_v20 = vmul.f32 %v2588_v35, %v3492_v15  ;;  %v2590_v46 = vpop.eup %2589  ;;  %v3594_v15 = vpop.f32.mrf.mxu2 }
 0x498   : > { %v1014_v2 = vpop.xlane.xlu2 %1013  ;;  %v2592_v10 = vpop.eup %2591  ;;  %v1199_v1 = vmul.f32 %v2590_v46, %v3418_v18  ;;  %v1200_v51 = vmul.f32 %v2590_v46, %v3421_v29 }
 0x499   : > { %2595 = vrcp.f32 %v1014_v2  ;;  %v1203_v34 = vpack.c.bf16 %v1143_v55, %v1141_v43  ;;  %v1204_v48 = vpack.c.bf16 %v1144_v8, %v1142_v20  ;;  %v2594_v12 = vpop.eup %2593  ;;  %v1137_v54 = vmul.f32 %v2592_v10, %v3402_v56 }
 0x49a   : > { %2597 = vrcp.f32 %v1098_v37  ;;  %v1138_v50 = vmul.f32 %v2592_v10, %v3404_v5  ;;  %v1197_v37 = vmul.f32 %v2594_v12, %v3378_v22  ;;  %v1074_v10 = vpop.xlane.xlu1 %1073 }
 0x49b   : > { %1239 = vmatpush.bf16.xpose.msrb.mxu2 %v1203_v34  ;;  %1252 = vmatpush.bf16.xpose.msrb.mxu3 %v1204_v48  ;;  %2599 = vrcp.f32 %v1095_v63  ;;  %v1198_v63 = vmul.f32 %v2594_v12, %v3384_v57  ;;  %v442_v57 = vpop.f32.mrf.mxu3 }
 0x49c   : > { %v1231_v30 = vpack.c.bf16 %v1199_v1, %v1197_v37  ;;  %2601 = vrcp.f32 %v3572_v4 }
 0x49d   : > { %v1232_v29 = vpack.c.bf16 %v1200_v51, %v1198_v63  ;;  %2603 = vrcp.f32 %v3570_v53  ;;  %v1080_v53 = vpop.xlane.xlu0 %1079 }
 0x49e   : > { %2605 = vrcp.f32 %v3580_v7 }
 0x49f   : > { %v2596_v36 = vpop.eup %2595  ;;  %v423_v22 = vpop.f32.mrf.mxu2  ;;  %2607 = vrcp.f32 %v3574_v61 }
 0x4a0   : > { %v1139_v62 = vmul.f32 %v2596_v36, %v3508_v44  ;;  %v1140_v17 = vmul.f32 %v2596_v36, %v3515_v19  ;;  %v2598_v31 = vpop.eup %2597  ;;  %v3608_v44 = vpack.c.bf16 %v423_v22, %v423_v22  ;;  %v3610_v19 = vpack.c.bf16 %v442_v57, %v442_v57  ;;  %v4544_v57 = vld [vmem:[#allocation16_spill] sm:$0xff] }
 0x4a1   : > { %v2600_v47 = vpop.eup %2599  ;;  %v1195_v56 = vmul.f32 %v2598_v31, %v3388_v58  ;;  %v1196_v5 = vmul.f32 %v2598_v31, %v3392_v23  ;;  %2609 = vrcp.f32 %v1080_v53 }
 0x4a2   : > { %v1201_v28 = vpack.c.bf16 %v1139_v62, %v1137_v54  ;;  %v1202_v18 = vpack.c.bf16 %v1140_v17, %v1138_v50  ;;  %v1193_v38 = vmul.f32 %v2600_v47, %v3360_v9  ;;  %v1194_v59 = vmul.f32 %v2600_v47, %v3364_v42  ;;  %v2602_v35 = vpop.eup %2601 }
 0x4a3   : > { %v2604_v23 = vpop.eup %2603  ;;  %v1189_v55 = vmul.f32 %v2602_v35, %v3438_v27  ;;  %v1190_v43 = vmul.f32 %v2602_v35, %v3440_v11  ;;  %2611 = vrcp.f32 %v3586_v26 }
 0x4a4   : > { %1240 = vmatpush.bf16.xpose.msrb.mxu2 %v1201_v28  ;;  %1253 = vmatpush.bf16.xpose.msrb.mxu3 %v1202_v18  ;;  %v1229_v4 = vpack.c.bf16 %v1195_v56, %v1193_v38  ;;  %v1230_v58 = vpack.c.bf16 %v1196_v5, %v1194_v59  ;;  %v1191_v9 = vmul.f32 %v2604_v23, %v3344_v14  ;;  %v2606_v2 = vpop.eup %2605  ;;  %v1059_v28 = vpop.xlane.xlu1 %1058  ;;  %v4543_v5 = vld [vmem:[#allocation9_spill] sm:$0xff]  ;;  %v4545_v59 = vld [vmem:[#allocation11_spill] sm:$0xff] }
 0x4a5   : > { %v1192_v42 = vmul.f32 %v2604_v23, %v3347_v0  ;;  %v2608_v34 = vpop.eup %2607  ;;  %v1187_v7 = vmul.f32 %v2606_v2, %v3468_v6  ;;  %v1188_v48 = vmul.f32 %v2606_v2, %v3476_v25  ;;  %v1071_v27 = vpop.xlane.xlu0 %1070 }
 0x4a6   : > { %v1227_v20 = vpack.c.bf16 %v1191_v9, %v1189_v55  ;;  %v1185_v11 = vmul.f32 %v2608_v34, %v3352_v3  ;;  %v1186_v14 = vmul.f32 %v2608_v34, %v3357_v24  ;;  %2613 = vrcp.f32 %v1071_v27  ;;  %v1065_v25 = vpop.xlane.xlu2 %1064 }
 0x4a7   : > { %v1228_v8 = vpack.c.bf16 %v1192_v42, %v1190_v43  ;;  %v2610_v46 = vpop.eup %2609  ;;  %2615 = vrcp.f32 %v1074_v10  ;;  %v3655_v42 = vpop.f32.mrf.mxu2 }
 0x4a8   : > { %v1225_v61 = vpack.c.bf16 %v1187_v7, %v1185_v11  ;;  %v1226_v0 = vpack.c.bf16 %v1188_v48, %v1186_v14  ;;  %v1183_v36 = vmul.f32 %v2610_v46, %v3510_v45  ;;  %v1184_v6 = vmul.f32 %v2610_v46, %v3512_v49  ;;  %4547 = vst [vmem:[#allocation17_spill] sm:$0xff] %v3655_v42 }
 0x4a9   : > { %v2612_v12 = vpop.eup %2611 }
 0x4aa   : > { %v1181_v26 = vmul.f32 %v2612_v12, %v3494_v52  ;;  %v1182_v3 = vmul.f32 %v2612_v12, %v3498_v32 }
 0x4ab   : > { %1241 = vmatmul.bf16.vlgmr.msrb.gmra.mxu2 %v3608_v44  ;;  %1254 = vmatmul.bf16.vlgmr.msrb.gmra.mxu3 %v3610_v19 }
 0x4ac   : > { %1259 = vmatpush.bf16.xpose.msra.mxu2 %v1231_v30  ;;  %1272 = vmatpush.bf16.xpose.msra.mxu3 %v1232_v29  ;;  %v1223_v24 = vpack.c.bf16 %v1183_v36, %v1181_v26  ;;  %v1224_v51 = vpack.c.bf16 %v1184_v6, %v1182_v3  ;;  %v2614_v54 = vpop.eup %2613  ;;  %v4542_v29 = vld [vmem:[#allocation15_spill] sm:$0xff] }
 0x4ad   : > { %v1068_v1 = vpop.xlane.xlu0 %1067  ;;  %v2616_v62 = vpop.eup %2615  ;;  %v1177_v50 = vmul.f32 %v2614_v54, %v3524_v39  ;;  %v1178_v45 = vmul.f32 %v2614_v54, %v3526_v40 }
 0x4ae   : > { %2617 = vrcp.f32 %v1068_v1  ;;  %v1179_v49 = vmul.f32 %v2616_v62, %v3444_v60  ;;  %v1180_v17 = vmul.f32 %v2616_v62, %v3448_v13  ;;  %v1062_v52 = vpop.xlane.xlu2 %1061 }
 0x4af   : > { %2619 = vrcp.f32 %v1065_v25 }
 0x4b0   : > { %v1221_v37 = vpack.c.bf16 %v1179_v49, %v1177_v50  ;;  %v1222_v32 = vpack.c.bf16 %v1180_v17, %v1178_v45  ;;  %2621 = vrcp.f32 %v1062_v52 }
 0x4b1   : > { %2623 = vrcp.f32 %v1059_v28 }
 0x4b4   : > { %1260 = vmatpush.bf16.xpose.msra.mxu2 %v1229_v4  ;;  %1273 = vmatpush.bf16.xpose.msra.mxu3 %v1230_v58  ;;  %v2618_v63 = vpop.eup %2617  ;;  %v4546_v4 = vld [vmem:[#allocation14_spill] sm:$0xff] }
 0x4b5   : > { %v2620_v18 = vpop.eup %2619  ;;  %v1175_v30 = vmul.f32 %v2618_v63, %v3536_v16  ;;  %v1176_v39 = vmul.f32 %v2618_v63, %v3538_v41  ;;  %v1289_v16 = vpack.c.bf16 %v3594_v15, %v3594_v15  ;;  %v1290_v41 = vpack.c.bf16 %v3596_v21, %v3596_v21 }
 0x4b6   : > { %v1173_v40 = vmul.f32 %v2620_v18, %v3528_v33  ;;  %v1174_v60 = vmul.f32 %v2620_v18, %v4542_v29  ;;  %v2622_v47 = vpop.eup %2621 }
 0x4b7   : > { %v2624_v56 = vpop.eup %2623  ;;  %v1171_v22 = vmul.f32 %v2622_v47, %v4543_v5  ;;  %v1172_v38 = vmul.f32 %v2622_v47, %v4544_v57  ;;  %v1366_v53 = vsel %vm536_vm4, %v1289_v16, 0  ;;  %v1369_v55 = vsel %vm536_vm4, %v1290_v41, 0 }
 0x4b8   : > { %v1219_v31 = vpack.c.bf16 %v1175_v30, %v1173_v40  ;;  %v1220_v13 = vpack.c.bf16 %v1176_v39, %v1174_v60  ;;  %v1169_v33 = vmul.f32 %v2624_v56, %v4545_v59  ;;  %v1170_v58 = vmul.f32 %v2624_v56, %v4546_v4 }
 0x4ba   : > { %v1217_v35 = vpack.c.bf16 %v1171_v22, %v1169_v33  ;;  %v1218_v23 = vpack.c.bf16 %v1172_v38, %v1170_v58 }
 0x4bc   : > { %1261 = vmatpush.bf16.xpose.msra.mxu2 %v1227_v20  ;;  %1274 = vmatpush.bf16.xpose.msra.mxu3 %v1228_v8  ;;  %v3657_v20 = vpop.f32.mrf.mxu3 }
 0x4bd   : > { %4548 = vst [vmem:[#allocation10_spill] sm:$0xff] %v3657_v20 }
 0x4c4   : > { %1262 = vmatpush.bf16.xpose.msra.mxu2 %v1225_v61  ;;  %1275 = vmatpush.bf16.xpose.msra.mxu3 %v1226_v0 }
 0x4cc   : > { %1263 = vmatpush.bf16.xpose.msra.mxu2 %v1223_v24  ;;  %1276 = vmatpush.bf16.xpose.msra.mxu3 %v1224_v51 }
 0x4d4   : > { %1264 = vmatpush.bf16.xpose.msra.mxu2 %v1221_v37  ;;  %1277 = vmatpush.bf16.xpose.msra.mxu3 %v1222_v32 }
 0x4dc   : > { %1265 = vmatpush.bf16.xpose.msra.mxu2 %v1219_v31  ;;  %1278 = vmatpush.bf16.xpose.msra.mxu3 %v1220_v13 }
 0x4e4   : > { %1266 = vmatpush.bf16.xpose.msra.mxu2 %v1217_v35  ;;  %1279 = vmatpush.bf16.xpose.msra.mxu3 %v1218_v23 }
 0x4eb   : > { %1267 = vmatmul.bf16.vlgmr.msra.gmra.mxu2 %v3608_v44  ;;  %1280 = vmatmul.bf16.vlgmr.msra.gmra.mxu3 %v3610_v19 }
 0x4ec   : > { %1378 = vmatpush.bf16.msrb.mxu2 %v1366_v53  ;;  %1467 = vmatpush.bf16.msrb.mxu3 %v1369_v55 }
 0x509   : > { %v1301_v15 = vpop.trf.xlu0 }
 0x50a   : > { %2328 = vmatmul.msk.bf16.vlgmr.msrb.gmra.mxu2 %vm487_vm5, %v1301_v15  ;;  %2344 = vmatmul.msk.bf16.vlgmr.msrb.gmra.mxu3 %vm487_vm5, %v1301_v15 }
 0x511   : > { %v1302_v21 = vpop.trf.xlu0 }
 0x519   : > { %v1303_v43 = vpop.trf.xlu0 }
 0x51a   : > { %2329 = vmatmul.msk.bf16.gmra.mxu2 %vm487_vm5, %v1303_v43  ;;  %2345 = vmatmul.msk.bf16.gmra.mxu3 %vm487_vm5, %v1303_v43 }
 0x521   : > { %v1304_v9 = vpop.trf.xlu0 }
 0x529   : > { %v1305_v8 = vpop.trf.xlu0 }
 0x52a   : > { %2330 = vmatmul.msk.bf16.gmra.mxu2 %vm487_vm5, %v1305_v8  ;;  %2346 = vmatmul.msk.bf16.gmra.mxu3 %vm487_vm5, %v1305_v8 }
 0x52e   : > { %v1242_v44 = vpop.f32.mrf.mxu2  ;;  %v1255_v19 = vpop.f32.mrf.mxu3 }
 0x52f   : > { %v3661_v2 = vadd.f32 %v1255_v19, %v1242_v44 }
 0x531   : > { %4549 = vst [vmem:[#allocation12_spill] sm:$0xff] %v3661_v2  ;;  %v1306_v34 = vpop.trf.xlu0 }
 0x536   : > { %v1244_v7 = vpop.f32.mrf.mxu2  ;;  %v1257_v48 = vpop.f32.mrf.mxu3 }
 0x539   : > { %v1307_v27 = vpop.trf.xlu0 }
 0x53a   : > { %2331 = vmatmul.msk.bf16.gmra.mxu2 %vm487_vm5, %v1307_v27  ;;  %2347 = vmatmul.msk.bf16.gmra.mxu3 %vm487_vm5, %v1307_v27 }
 0x541   : > { %v1308_v11 = vpop.trf.xlu0 }
 0x549   : > { %v1309_v14 = vpop.trf.xlu0 }
 0x54a   : > { %2332 = vmatmul.msk.bf16.gmra.mxu2 %vm487_vm5, %v1309_v14  ;;  %2348 = vmatmul.msk.bf16.gmra.mxu3 %vm487_vm5, %v1309_v14 }
 0x551   : > { %v1310_v61 = vpop.trf.xlu0 }
 0x559   : > { %v1311_v0 = vpop.trf.xlu0 }
 0x55a   : > { %2333 = vmatmul.msk.bf16.gmra.mxu2 %vm487_vm5, %v1311_v0  ;;  %2349 = vmatmul.msk.bf16.gmra.mxu3 %vm487_vm5, %v1311_v0 }
 0x561   : > { %v1312_v46 = vpop.trf.xlu0 }
 0x569   : > { %v1313_v6 = vpop.trf.xlu0 }
 0x56a   : > { %2334 = vmatmul.msk.bf16.gmra.mxu2 %vm487_vm5, %v1313_v6  ;;  %2350 = vmatmul.msk.bf16.gmra.mxu3 %vm487_vm5, %v1313_v6 }
 0x56e   : > { %v1268_v10 = vpop.f32.mrf.mxu2  ;;  %v1281_v12 = vpop.f32.mrf.mxu3 }
 0x56f   : > { %v3669_v36 = vadd.f32 %v1281_v12, %v1268_v10 }
 0x571   : > { %4550 = vst [vmem:[#allocation13_spill] sm:$0xff] %v3669_v36  ;;  %v1314_v3 = vpop.trf.xlu0 }
 0x576   : > { %v1270_v25 = vpop.f32.mrf.mxu2  ;;  %v1283_v26 = vpop.f32.mrf.mxu3 }
 0x579   : > { %v1315_v1 = vpop.trf.xlu0 }
 0x57a   : > { %2335 = vmatmul.msk.bf16.gmra.mxu2 %vm487_vm5, %v1315_v1  ;;  %2351 = vmatmul.msk.bf16.gmra.mxu3 %vm487_vm5, %v1315_v1 }
 0x581   : > { %v1316_v8 = vpop.trf.xlu0 }
 0x58a   : > { %2336 = vmatmul.msk.bf16.gmra.mxu2 %vm487_vm5, %v1302_v21  ;;  %2352 = vmatmul.msk.bf16.gmra.mxu3 %vm487_vm5, %v1302_v21 }
 0x58d   : > { %v3677_v24 = vpop.f32.mrf.mxu2  ;;  %v3679_v51 = vpop.f32.mrf.mxu3 }
 0x58e   : > { %4551 = vst [vmem:[#allocation33_spill] sm:$0xff] %v3677_v24 }
 0x58f   : > { %4552 = vst [vmem:[#allocation18_spill] sm:$0xff] %v3679_v51 }
 0x595   : > { %v3681_v54 = vpop.f32.mrf.mxu2  ;;  %v3683_v62 = vpop.f32.mrf.mxu3 }
 0x59a   : > { %2337 = vmatmul.msk.bf16.gmra.mxu2 %vm487_vm5, %v1304_v9  ;;  %2353 = vmatmul.msk.bf16.gmra.mxu3 %vm487_vm5, %v1304_v9 }
 0x59d   : > { %v3687_v50 = vpop.f32.mrf.mxu2  ;;  %v3689_v45 = vpop.f32.mrf.mxu3 }
 0x5a5   : > { %v3691_v49 = vpop.f32.mrf.mxu2  ;;  %v3693_v17 = vpop.f32.mrf.mxu3 }
 0x5aa   : > { %2338 = vmatmul.msk.bf16.gmra.mxu2 %vm487_vm5, %v1306_v34  ;;  %2354 = vmatmul.msk.bf16.gmra.mxu3 %vm487_vm5, %v1306_v34 }
 0x5ad   : > { %v3697_v52 = vpop.f32.mrf.mxu2  ;;  %v3699_v37 = vpop.f32.mrf.mxu3 }
 0x5b5   : > { %v3701_v32 = vpop.f32.mrf.mxu2  ;;  %v3703_v63 = vpop.f32.mrf.mxu3 }
 0x5ba   : > { %2339 = vmatmul.msk.bf16.gmra.mxu2 %vm487_vm5, %v1308_v11  ;;  %2355 = vmatmul.msk.bf16.gmra.mxu3 %vm487_vm5, %v1308_v11 }
 0x5bd   : > { %v3707_v28 = vpop.f32.mrf.mxu2  ;;  %v3709_v18 = vpop.f32.mrf.mxu3 }
 0x5be   : > { %v1567_v34 = vmax.f32 %v3707_v28, %v3709_v18 }
 0x5c5   : > { %v3711_v30 = vpop.f32.mrf.mxu2  ;;  %v3713_v39 = vpop.f32.mrf.mxu3 }
 0x5c6   : > { %v1570_v43 = vmax.f32 %v3711_v30, %v3713_v39 }
 0x5ca   : > { %2340 = vmatmul.msk.bf16.gmra.mxu2 %vm487_vm5, %v1310_v61  ;;  %2356 = vmatmul.msk.bf16.gmra.mxu3 %vm487_vm5, %v1310_v61 }
 0x5cd   : > { %v3717_v40 = vpop.f32.mrf.mxu2  ;;  %v3719_v29 = vpop.f32.mrf.mxu3 }
 0x5ce   : > { %v1573_v60 = vmax.f32 %v3717_v40, %v3719_v29 }
 0x5d0   : > { %1574 = vmax.xlane.f32.xlu1 %v1573_v60 }
 0x5d5   : > { %v3723_v31 = vpop.f32.mrf.mxu2  ;;  %v3725_v13 = vpop.f32.mrf.mxu3 }
 0x5d6   : > { %v1576_v47 = vmax.f32 %v3723_v31, %v3725_v13 }
 0x5d8   : > { %1577 = vmax.xlane.f32.xlu2 %v1576_v47 }
 0x5da   : > { %2341 = vmatmul.msk.bf16.gmra.mxu2 %vm487_vm5, %v1312_v46  ;;  %2357 = vmatmul.msk.bf16.gmra.mxu3 %vm487_vm5, %v1312_v46 }
 0x5dd   : > { %v3731_v56 = vpop.f32.mrf.mxu2  ;;  %v3733_v5 = vpop.f32.mrf.mxu3 }
 0x5de   : > { %v1579_v22 = vmax.f32 %v3731_v56, %v3733_v5 }
 0x5e0   : > { %1580 = vmax.xlane.f32.xlu1 %v1579_v22 }
 0x5e5   : > { %v3737_v57 = vpop.f32.mrf.mxu2  ;;  %v3739_v38 = vpop.f32.mrf.mxu3 }
 0x5e6   : > { %v1582_v16 = vmax.f32 %v3737_v57, %v3739_v38 }
 0x5e8   : > { %1583 = vmax.xlane.f32.xlu2 %v1582_v16 }
 0x5ea   : > { %2342 = vmatmul.msk.bf16.gmra.mxu2 %vm487_vm5, %v1314_v3  ;;  %2358 = vmatmul.msk.bf16.gmra.mxu3 %vm487_vm5, %v1314_v3 }
 0x5ed   : > { %v3745_v41 = vpop.f32.mrf.mxu2  ;;  %v3747_v59 = vpop.f32.mrf.mxu3 }
 0x5ee   : > { %v1585_v33 = vmax.f32 %v3745_v41, %v3747_v59 }
 0x5f0   : > { %1586 = vmax.xlane.f32.xlu1 %v1585_v33 }
 0x5f5   : > { %v3751_v4 = vpop.f32.mrf.mxu2  ;;  %v3753_v58 = vpop.f32.mrf.mxu3 }
 0x5f6   : > { %v1588_v35 = vmax.f32 %v3751_v4, %v3753_v58 }
 0x5f8   : > { %1589 = vmax.xlane.f32.xlu2 %v1588_v35 }
 0x5fa   : > { %2343 = vmatmul.msk.bf16.gmra.mxu2 %vm487_vm5, %v1316_v8  ;;  %2359 = vmatmul.msk.bf16.gmra.mxu3 %vm487_vm5, %v1316_v8 }
 0x5fd   : > { %v3757_v23 = vpop.f32.mrf.mxu2  ;;  %v3759_v53 = vpop.f32.mrf.mxu3 }
 0x5fe   : > { %v1591_v55 = vmax.f32 %v3757_v23, %v3759_v53 }
 0x600   : > { %1592 = vmax.xlane.f32.xlu1 %v1591_v55 }
 0x605   : > { %v3763_v15 = vpop.f32.mrf.mxu2  ;;  %v3765_v21 = vpop.f32.mrf.mxu3 }
 0x606   : > { %v1594_v9 = vmax.f32 %v3763_v15, %v3765_v21 }
 0x608   : > { %1571 = vmax.xlane.f32.xlu1 %v1570_v43  ;;  %1595 = vmax.xlane.f32.xlu2 %v1594_v9  ;;  %v1561_v9 = vmax.f32 %v3697_v52, %v3699_v37 }
 0x60d   : > { %v3773_v44 = vpop.f32.mrf.mxu2  ;;  %v3775_v19 = vpop.f32.mrf.mxu3 }
 0x610   : > { %1568 = vmax.xlane.f32.xlu2 %v1567_v34 }
 0x615   : > { %v3779_v7 = vpop.f32.mrf.mxu2  ;;  %v3781_v48 = vpop.f32.mrf.mxu3 }
 0x61d   : > { %v3783_v27 = vpop.f32.mrf.mxu2  ;;  %v3785_v11 = vpop.f32.mrf.mxu3 }
 0x61e   : > { %4553 = vst [vmem:[#allocation34_spill] sm:$0xff] %v3783_v27 }
 0x61f   : > { %4554 = vst [vmem:[#allocation31_spill] sm:$0xff] %v3785_v11 }
 0x625   : > { %v3787_v14 = vpop.f32.mrf.mxu2  ;;  %v3789_v61 = vpop.f32.mrf.mxu3 }
 0x626   : > { %4555 = vst [vmem:[#allocation32_spill] sm:$0xff] %v3789_v61 }
 0x62d   : > { %v3791_v0 = vpop.f32.mrf.mxu2  ;;  %v3793_v46 = vpop.f32.mrf.mxu3 }
 0x62e   : > { %4556 = vst [vmem:[#allocation21_spill] sm:$0xff] %v3793_v46 }
 0x635   : > { %v3795_v10 = vpop.f32.mrf.mxu2  ;;  %v3797_v12 = vpop.f32.mrf.mxu3 }
 0x63d   : > { %v3799_v6 = vpop.f32.mrf.mxu2  ;;  %v3801_v25 = vpop.f32.mrf.mxu3 }
 0x63e   : > { %4557 = vst [vmem:[#allocation22_spill] sm:$0xff] %v3799_v6  ;;  %v1615_v42 = vmax.f32 %v3799_v6, %v3801_v25 }
 0x63f   : > { %4558 = vst [vmem:[#allocation25_spill] sm:$0xff] %v3801_v25 }
 0x645   : > { %v3803_v26 = vpop.f32.mrf.mxu2  ;;  %v3805_v3 = vpop.f32.mrf.mxu3 }
 0x646   : > { %4559 = vst [vmem:[#allocation26_spill] sm:$0xff] %v3805_v3 }
 0x64d   : > { %v3807_v1 = vpop.f32.mrf.mxu2  ;;  %v3809_v60 = vpop.f32.mrf.mxu3 }
 0x64e   : > { %4560 = vst [vmem:[#allocation19_spill] sm:$0xff] %v3807_v1  ;;  %v1621_v2 = vmax.f32 %v3807_v1, %v3809_v60  ;;  %v3847_v1 = vpop.xlane.xlu1 %1574 }
 0x64f   : > { %4561 = vst [vmem:[#allocation20_spill] sm:$0xff] %v3809_v60  ;;  %v1558_v60 = vmax.f32 %v3691_v49, %v3693_v17 }
 0x655   : > { %v3811_v47 = vpop.f32.mrf.mxu2  ;;  %v3813_v22 = vpop.f32.mrf.mxu3 }
 0x65d   : > { %v3815_v16 = vpop.f32.mrf.mxu2  ;;  %v3817_v33 = vpop.f32.mrf.mxu3 }
 0x65e   : > { %v1627_v35 = vmax.f32 %v3815_v16, %v3817_v33 }
 0x660   : > { %1628 = vmax.xlane.f32.xlu2 %v1627_v35  ;;  %v1564_v35 = vmax.f32 %v3701_v32, %v3703_v63 }
 0x665   : > { %v3821_v55 = vpop.f32.mrf.mxu2  ;;  %v3823_v43 = vpop.f32.mrf.mxu3 }
 0x666   : > { %v1630_v8 = vmax.f32 %v3821_v55, %v3823_v43 }
 0x668   : > { %1562 = vmax.xlane.f32.xlu2 %v1561_v9  ;;  %1631 = vmax.xlane.f32.xlu1 %v1630_v8  ;;  %v1555_v9 = vmax.f32 %v3687_v50, %v3689_v45  ;;  %v1624_v8 = vmax.f32 %v3811_v47, %v3813_v22 }
 0x66d   : > { %v3829_v34 = vpop.f32.mrf.mxu2  ;;  %v3831_v36 = vpop.f32.mrf.mxu3 }
 0x66e   : > { %v1633_v20 = vmax.f32 %v3829_v34, %v3831_v36 }
 0x670   : > { %1622 = vmax.xlane.f32.xlu2 %v1621_v2  ;;  %1565 = vmax.xlane.f32.xlu1 %v1564_v35  ;;  %v1618_v2 = vmax.f32 %v3803_v26, %v3805_v3  ;;  %v3853_v35 = vpop.xlane.xlu2 %1577 }
 0x671   : > { %1634 = vmax.xlane.f32.xlu0 %v1633_v20  ;;  %v1549_v20 = vmax.f32 %v3677_v24, %v3679_v51 }
 0x678   : > { %1556 = vmax.xlane.f32.xlu2 %v1555_v9  ;;  %1625 = vmax.xlane.f32.xlu1 %v1624_v8  ;;  %v1581_v9 = vpop.xlane.xlu1 %1580  ;;  %v1584_v6 = vpop.xlane.xlu2 %1583 }
 0x679   : > { %v1665_v8 = vsub.f32 %v3731_v56, %v1581_v9  ;;  %v1666_v25 = vsub.f32 %v3733_v5, %v1581_v9  ;;  %v1603_v9 = vmax.f32 %v3783_v27, %v3785_v11  ;;  %v1663_v11 = vsub.f32 %v3723_v31, %v3853_v35 }
 0x67b   : > { %v1749_v51 = vmul.f32 1.442695, %v1665_v8  ;;  %v1751_v24 = vmul.f32 1.442695, %v1666_v25  ;;  %v1612_v8 = vmax.f32 %v3795_v10, %v3797_v12 }
 0x67d   : > { %2625 = vpow2.f32 %v1749_v51 }
 0x67e   : > { %2627 = vpow2.f32 %v1751_v24 }
 0x680   : > { %1616 = vmax.xlane.f32.xlu2 %v1615_v42  ;;  %1559 = vmax.xlane.f32.xlu1 %v1558_v60  ;;  %v1609_v42 = vmax.f32 %v3791_v0, %v3793_v46  ;;  %v1552_v60 = vmax.f32 %v3681_v54, %v3683_v62  ;;  %v1587_v3 = vpop.xlane.xlu1 %1586 }
 0x681   : > { %v1669_v56 = vsub.f32 %v3745_v41, %v1587_v3  ;;  %v1670_v5 = vsub.f32 %v3747_v59, %v1587_v3  ;;  %v3879_v3 = vpop.f32.mrf.mxu2 }
 0x683   : > { %v1757_v25 = vmul.f32 1.442695, %v1669_v56 }
 0x688   : > { %1550 = vmax.xlane.f32.xlu2 %v1549_v20  ;;  %1619 = vmax.xlane.f32.xlu1 %v1618_v2  ;;  %v1667_v20 = vsub.f32 %v3737_v57, %v1584_v6  ;;  %v1668_v2 = vsub.f32 %v3739_v38, %v1584_v6  ;;  %v1759_v57 = vmul.f32 1.442695, %v1670_v5  ;;  %v3869_v38 = vpop.eup %2625  ;;  %v1606_v6 = vmax.f32 %v3787_v14, %v3789_v61 }
 0x689   : > { %v3871_v51 = vpop.eup %2627 }
 0x68a   : > { %v1753_v46 = vmul.f32 1.442695, %v1667_v20  ;;  %v1867_v59 = vadd.f32 %v3871_v51, %v3869_v38  ;;  %v3881_v20 = vpop.f32.mrf.mxu3 }
 0x68c   : > { %2629 = vpow2.f32 %v1753_v46 }
 0x690   : > { %1610 = vmax.xlane.f32.xlu2 %v1609_v42  ;;  %1553 = vmax.xlane.f32.xlu1 %v1552_v60  ;;  %v1755_v42 = vmul.f32 1.442695, %v1668_v2  ;;  %v1593_v60 = vpop.xlane.xlu1 %1592 }
 0x691   : > { %v1673_v24 = vsub.f32 %v3757_v23, %v1593_v60  ;;  %v1674_v41 = vsub.f32 %v3759_v53, %v1593_v60  ;;  %v1590_v23 = vpop.xlane.xlu2 %1589  ;;  %v3897_v60 = vpop.f32.mrf.mxu2 }
 0x692   : > { %2631 = vpow2.f32 %v1755_v42  ;;  %v3883_v46 = vpop.eup %2629  ;;  %v1672_v42 = vsub.f32 %v3753_v58, %v1590_v23 }
 0x693   : > { %2633 = vpow2.f32 %v1757_v25  ;;  %v1765_v2 = vmul.f32 1.442695, %v1673_v24  ;;  %v1767_v5 = vmul.f32 1.442695, %v1674_v41  ;;  %v3899_v24 = vpop.f32.mrf.mxu3 }
 0x694   : > { %2635 = vpow2.f32 %v1759_v57 }
 0x695   : > { %2637 = vpow2.f32 %v1765_v2  ;;  %v1636_v2 = vmax.f32 %v3879_v3, %v3881_v20 }
 0x696   : > { %2639 = vpow2.f32 %v1767_v5 }
 0x698   : > { %1604 = vmax.xlane.f32.xlu2 %v1603_v9  ;;  %1613 = vmax.xlane.f32.xlu1 %v1612_v8  ;;  %v3885_v56 = vpop.eup %2631  ;;  %v1671_v8 = vsub.f32 %v3751_v4, %v1590_v23  ;;  %v1572_v31 = vpop.xlane.xlu1 %1571 }
 0x699   : > { %v3887_v53 = vpop.eup %2633  ;;  %v1870_v57 = vadd.f32 %v3885_v56, %v3883_v46  ;;  %v3909_v23 = vpop.xlane.xlu2 %1595 }
 0x69a   : > { %v3889_v9 = vpop.eup %2635  ;;  %v1761_v41 = vmul.f32 1.442695, %v1671_v8  ;;  %v3911_v5 = vpop.f32.mrf.mxu2 }
 0x69b   : > { %v1873_v25 = vadd.f32 %v3889_v9, %v3887_v53  ;;  %v3913_v8 = vpop.f32.mrf.mxu3 }
 0x69c   : > { %2641 = vpow2.f32 %v1761_v41  ;;  %v1642_v41 = vmax.f32 %v3911_v5, %v3913_v8 }
 0x6a0   : > { %1868 = vadd.xlane.f32.xlu2 %v1867_v59  ;;  %1607 = vmax.xlane.f32.xlu1 %v1606_v6  ;;  %v1763_v59 = vmul.f32 1.442695, %v1672_v42  ;;  %v3901_v6 = vpop.eup %2637 }
 0x6a1   : > { %4562 = vst [vmem:[#allocation29_spill] sm:$0xff] %v3901_v6  ;;  %v3903_v4 = vpop.eup %2639 }
 0x6a2   : > { %4563 = vst [vmem:[#allocation30_spill] sm:$0xff] %v3903_v4  ;;  %2643 = vpow2.f32 %v1763_v59  ;;  %v1879_v58 = vadd.f32 %v3903_v4, %v3901_v6  ;;  %v3915_v42 = vpop.eup %2641  ;;  %v1662_v59 = vsub.f32 %v3719_v29, %v3847_v1  ;;  %v1569_v6 = vpop.xlane.xlu2 %1568 }
 0x6a3   : > { %v1657_v27 = vsub.f32 %v3707_v28, %v1569_v6  ;;  %v1658_v29 = vsub.f32 %v3709_v18, %v1569_v6  ;;  %v1659_v18 = vsub.f32 %v3711_v30, %v1572_v31 }
 0x6a4   : > { %v1743_v4 = vmul.f32 1.442695, %v1662_v59 }
 0x6a5   : > { %v1735_v61 = vmul.f32 1.442695, %v1658_v29 }
 0x6a8   : > { %1874 = vadd.xlane.f32.xlu2 %v1873_v25  ;;  %1871 = vadd.xlane.f32.xlu1 %v1870_v57  ;;  %v3917_v25 = vpop.eup %2643  ;;  %v1661_v57 = vsub.f32 %v3717_v40, %v3847_v1  ;;  %v1664_v40 = vsub.f32 %v3725_v13, %v3853_v35  ;;  %v1597_v1 = vmax.f32 %v3773_v44, %v3775_v19 }
 0x6a9   : > { %v1600_v35 = vmax.f32 %v3779_v7, %v3781_v48 }
 0x6aa   : > { %v1747_v59 = vmul.f32 1.442695, %v1664_v40 }
 0x6b0   : > { %1880 = vadd.xlane.f32.xlu2 %v1879_v58  ;;  %1637 = vmax.xlane.f32.xlu1 %v1636_v2  ;;  %v1876_v58 = vadd.f32 %v3917_v25, %v3915_v42  ;;  %v1741_v2 = vmul.f32 1.442695, %v1661_v57  ;;  %v1745_v57 = vmul.f32 1.442695, %v1663_v11  ;;  %v1660_v11 = vsub.f32 %v3713_v39, %v1572_v31 }
 0x6b2   : > { %2645 = vpow2.f32 %v1741_v2  ;;  %v1739_v40 = vmul.f32 1.442695, %v1660_v11 }
 0x6b3   : > { %2647 = vpow2.f32 %v1743_v4  ;;  %v1737_v4 = vmul.f32 1.442695, %v1659_v18 }
 0x6b4   : > { %2649 = vpow2.f32 %v1745_v57 }
 0x6b5   : > { %2651 = vpow2.f32 %v1747_v59 }
 0x6b8   : > { %1877 = vadd.xlane.f32.xlu1 %v1876_v58  ;;  %1643 = vmax.xlane.f32.xlu2 %v1642_v41  ;;  %v1639_v41 = vmax.f32 %v3897_v60, %v3899_v24  ;;  %v1733_v58 = vmul.f32 1.442695, %v1657_v27  ;;  %v3937_v13 = vpop.eup %2645 }
 0x6b9   : > { %4564 = vst [vmem:[#allocation23_spill] sm:$0xff] %v3937_v13  ;;  %v3939_v28 = vpop.eup %2647 }
 0x6ba   : > { %4565 = vst [vmem:[#allocation24_spill] sm:$0xff] %v3939_v28  ;;  %2653 = vpow2.f32 %v1733_v58  ;;  %v1861_v27 = vadd.f32 %v3939_v28, %v3937_v13  ;;  %v3947_v6 = vpop.eup %2649 }
 0x6bb   : > { %2655 = vpow2.f32 %v1735_v61  ;;  %v3949_v2 = vpop.eup %2651 }
 0x6bc   : > { %4566 = vst [vmem:[#allocation5_spill] sm:$0xff] %v3949_v2  ;;  %2657 = vpow2.f32 %v1737_v4  ;;  %v1864_v39 = vadd.f32 %v3949_v2, %v3947_v6 }
 0x6bd   : > { %2659 = vpow2.f32 %v1739_v40 }
 0x6c0   : > { %1640 = vmax.xlane.f32.xlu1 %v1639_v41  ;;  %1598 = vmax.xlane.f32.xlu2 %v1597_v1  ;;  %v3951_v29 = vpop.eup %2653 }
 0x6c1   : > { %4567 = vst [vmem:[#allocation6_spill] sm:$0xff] %v3951_v29  ;;  %v3953_v30 = vpop.eup %2655 }
 0x6c2   : > { %4568 = vst [vmem:[#allocation27_spill] sm:$0xff] %v3953_v30  ;;  %v1855_v61 = vadd.f32 %v3953_v30, %v3951_v29  ;;  %v3959_v1 = vpop.eup %2657 }
 0x6c3   : > { %4569 = vst [vmem:[#allocation28_spill] sm:$0xff] %v3959_v1  ;;  %v3961_v57 = vpop.eup %2659 }
 0x6c4   : > { %4570 = vst [vmem:[#allocation15_spill] sm:$0xff] %v3961_v57  ;;  %v1858_v59 = vadd.f32 %v3961_v57, %v3959_v1 }
 0x6c8   : > { %1601 = vmax.xlane.f32.xlu1 %v1600_v35  ;;  %1862 = vadd.xlane.f32.xlu2 %v1861_v27 }
 0x6d0   : > { %1865 = vadd.xlane.f32.xlu1 %v1864_v39  ;;  %1856 = vadd.xlane.f32.xlu2 %v1855_v61 }
 0x6d3   : > { %v1629_v41 = vpop.xlane.xlu2 %1628 }
 0x6d4   : > { %v1697_v35 = vsub.f32 %v3815_v16, %v1629_v41  ;;  %v1698_v40 = vsub.f32 %v3817_v33, %v1629_v41 }
 0x6d6   : > { %v1813_v39 = vmul.f32 1.442695, %v1697_v35  ;;  %v1815_v61 = vmul.f32 1.442695, %v1698_v40 }
 0x6d8   : > { %1859 = vadd.xlane.f32.xlu1 %v1858_v59 }
 0x6db   : > { %v1563_v58 = vpop.xlane.xlu2 %1562  ;;  %v1632_v31 = vpop.xlane.xlu1 %1631 }
 0x6dc   : > { %v1653_v18 = vsub.f32 %v3697_v52, %v1563_v58  ;;  %v1654_v11 = vsub.f32 %v3699_v37, %v1563_v58 }
 0x6de   : > { %v1725_v27 = vmul.f32 1.442695, %v1653_v18  ;;  %v1727_v4 = vmul.f32 1.442695, %v1654_v11  ;;  %v1675_v18 = vsub.f32 %v3763_v15, %v3909_v23 }
 0x6e0   : > { %2661 = vpow2.f32 %v1725_v27 }
 0x6e1   : > { %2663 = vpow2.f32 %v1727_v4 }
 0x6e2   : > { %2665 = vpow2.f32 %v1813_v39  ;;  %v1700_v39 = vsub.f32 %v3823_v43, %v1632_v31 }
 0x6e3   : > { %v3969_v30 = vpop.xlane.xlu2 %1622  ;;  %v1566_v29 = vpop.xlane.xlu1 %1565  ;;  %2667 = vpow2.f32 %v1815_v61 }
 0x6e4   : > { %v1655_v59 = vsub.f32 %v3701_v32, %v1566_v29  ;;  %v1656_v57 = vsub.f32 %v3703_v63, %v1566_v29  ;;  %v1635_v52 = vpop.xlane.xlu0 %1634  ;;  %v1676_v63 = vsub.f32 %v3765_v21, %v3909_v23  ;;  %v1699_v21 = vsub.f32 %v3821_v55, %v1632_v31 }
 0x6e5   : > { %v1701_v16 = vsub.f32 %v3829_v34, %v1635_v52  ;;  %v1702_v41 = vsub.f32 %v3831_v36, %v1635_v52  ;;  %v1769_v36 = vmul.f32 1.442695, %v1675_v18 }
 0x6e6   : > { %v3973_v1 = vpop.eup %2661  ;;  %v1729_v37 = vmul.f32 1.442695, %v1655_v59  ;;  %v1731_v33 = vmul.f32 1.442695, %v1656_v57  ;;  %v1771_v15 = vmul.f32 1.442695, %v1676_v63 }
 0x6e7   : > { %4571 = vst [vmem:[#allocation9_spill] sm:$0xff] %v3973_v1  ;;  %v3976_v58 = vpop.eup %2663  ;;  %v1821_v29 = vmul.f32 1.442695, %v1701_v16  ;;  %v1823_v34 = vmul.f32 1.442695, %v1702_v41 }
 0x6e8   : > { %4572 = vst [vmem:[#allocation16_spill] sm:$0xff] %v3976_v58  ;;  %v1849_v32 = vadd.f32 %v3976_v58, %v3973_v1  ;;  %2669 = vpow2.f32 %v1729_v37  ;;  %v3989_v57 = vpop.eup %2665  ;;  %v1817_v16 = vmul.f32 1.442695, %v1699_v21 }
 0x6e9   : > { %2671 = vpow2.f32 %v1731_v33  ;;  %v3991_v27 = vpop.eup %2667  ;;  %v1819_v33 = vmul.f32 1.442695, %v1700_v39 }
 0x6ea   : > { %1850 = vadd.xlane.f32.xlu2 %v1849_v32  ;;  %2673 = vpow2.f32 %v1821_v29  ;;  %v1915_v23 = vadd.f32 %v3991_v27, %v3989_v57 }
 0x6eb   : > { %v3985_v11 = vpop.xlane.xlu2 %1556  ;;  %v3987_v35 = vpop.xlane.xlu1 %1625  ;;  %2675 = vpow2.f32 %v1823_v34 }
 0x6ec   : > { %2677 = vpow2.f32 %v1769_v36 }
 0x6ed   : > { %2679 = vpow2.f32 %v1771_v15 }
 0x6ee   : > { %v3993_v4 = vpop.eup %2669  ;;  %2681 = vpow2.f32 %v1817_v16 }
 0x6ef   : > { %4573 = vst [vmem:[#allocation11_spill] sm:$0xff] %v3993_v4  ;;  %v3998_v40 = vpop.eup %2671  ;;  %2683 = vpow2.f32 %v1819_v33 }
 0x6f0   : > { %4574 = vst [vmem:[#allocation14_spill] sm:$0xff] %v3998_v40  ;;  %v1852_v61 = vadd.f32 %v3998_v40, %v3993_v4  ;;  %v4007_v37 = vpop.eup %2673 }
 0x6f1   : > { %4575 = vst [vmem:[#allocation35_spill] sm:$0xff] %v4007_v37  ;;  %v4009_v55 = vpop.eup %2675 }
 0x6f2   : > { %1916 = vadd.xlane.f32.xlu2 %v1915_v23  ;;  %1853 = vadd.xlane.f32.xlu1 %v1852_v61  ;;  %4576 = vst [vmem:[#allocation36_spill] sm:$0xff] %v4009_v55  ;;  %v4011_v41 = vpop.eup %2677  ;;  %v1921_v43 = vadd.f32 %v4009_v55, %v4007_v37 }
 0x6f3   : > { %v4003_v59 = vpop.xlane.xlu2 %1616  ;;  %v4005_v52 = vpop.xlane.xlu1 %1559 }
 0x6f4   : > { %v4013_v18 = vpop.eup %2679 }
 0x6f5   : > { %v1882_v31 = vadd.f32 %v4013_v18, %v4011_v41  ;;  %v4023_v29 = vpop.eup %2681 }
 0x6f6   : > { %v4025_v34 = vpop.eup %2683 }
 0x6f7   : > { %v1918_v36 = vadd.f32 %v4025_v34, %v4023_v29 }
 0x6fa   : > { %1922 = vadd.xlane.f32.xlu2 %v1921_v43  ;;  %1883 = vadd.xlane.f32.xlu1 %v1882_v31 }
 0x6fb   : > { %v4019_v32 = vpop.xlane.xlu2 %1550  ;;  %v4021_v63 = vpop.xlane.xlu1 %1619 }
 0x702   : > { %1919 = vadd.xlane.f32.xlu1 %v1918_v36 }
 0x703   : > { %v4029_v15 = vpop.xlane.xlu2 %1610  ;;  %v4031_v21 = vpop.xlane.xlu1 %1553 }
 0x70b   : > { %v4033_v23 = vpop.xlane.xlu2 %1604  ;;  %v4035_v39 = vpop.xlane.xlu1 %1613 }
 0x713   : > { %v1869_v61 = vpop.xlane.xlu2 %1868  ;;  %v4037_v16 = vpop.xlane.xlu1 %1607 }
 0x714   : > { %2685 = vrcp.f32 %v1869_v61 }
 0x71a   : > { %v2686_v31 = vpop.eup %2685 }
 0x71b   : > { %v1875_v33 = vpop.xlane.xlu2 %1874  ;;  %v1872_v43 = vpop.xlane.xlu1 %1871  ;;  %v4044_v40 = vmul.f32 %v2686_v31, %v3869_v38  ;;  %v4050_v61 = vmul.f32 %v2686_v31, %v3871_v51 }
 0x71c   : > { %2687 = vrcp.f32 %v1872_v43 }
 0x722   : > { %v2688_v55 = vpop.eup %2687 }
 0x723   : > { %v4039_v37 = vpop.xlane.xlu2 %1880  ;;  %v1638_v58 = vpop.xlane.xlu1 %1637  ;;  %v4047_v4 = vmul.f32 %v2688_v55, %v3883_v46  ;;  %v4053_v43 = vmul.f32 %v2688_v55, %v3885_v56 }
 0x724   : > { %v1703_v1 = vsub.f32 %v3879_v3, %v1638_v58  ;;  %v1704_v36 = vsub.f32 %v3881_v20, %v1638_v58  ;;  %v1696_v58 = vsub.f32 %v3813_v22, %v3987_v35  ;;  %v4587_v3 = vld [vmem:[#allocation31_spill] sm:$0xff] }
 0x726   : > { %v1825_v28 = vmul.f32 1.442695, %v1703_v1  ;;  %v1827_v13 = vmul.f32 1.442695, %v1704_v36  ;;  %v1695_v1 = vsub.f32 %v3811_v47, %v3987_v35  ;;  %v1811_v36 = vmul.f32 1.442695, %v1696_v58 }
 0x728   : > { %2689 = vpow2.f32 %v1825_v28 }
 0x729   : > { %2691 = vpow2.f32 %v1827_v13 }
 0x72a   : > { %2693 = vrcp.f32 %v1875_v33 }
 0x72b   : > { %v1878_v38 = vpop.xlane.xlu1 %1877  ;;  %v1644_v20 = vpop.xlane.xlu2 %1643 }
 0x72c   : > { %2695 = vrcp.f32 %v1878_v38  ;;  %v1707_v51 = vsub.f32 %v3911_v5, %v1644_v20  ;;  %v1708_v46 = vsub.f32 %v3913_v8, %v1644_v20  ;;  %v1809_v8 = vmul.f32 1.442695, %v1695_v1 }
 0x72e   : > { %v4061_v56 = vpop.eup %2689  ;;  %v1833_v55 = vmul.f32 1.442695, %v1707_v51  ;;  %v1835_v31 = vmul.f32 1.442695, %v1708_v46  ;;  %v4577_v51 = vld [vmem:[#allocation19_spill] sm:$0xff] }
 0x72f   : > { %v4067_v28 = vpop.eup %2691  ;;  %v1693_v46 = vsub.f32 %v4577_v51, %v3969_v30 }
 0x730   : > { %v2694_v13 = vpop.eup %2693  ;;  %2697 = vpow2.f32 %v1833_v55  ;;  %v1924_v33 = vadd.f32 %v4067_v28, %v4061_v56  ;;  %v4578_v55 = vld [vmem:[#allocation20_spill] sm:$0xff] }
 0x731   : > { %2699 = vpow2.f32 %v1835_v31  ;;  %v4072_v47 = vmul.f32 %v2694_v13, %v3887_v53  ;;  %v4078_v35 = vmul.f32 %v2694_v13, %v3889_v9  ;;  %v1694_v53 = vsub.f32 %v4578_v55, %v3969_v30 }
 0x732   : > { %v2696_v5 = vpop.eup %2695  ;;  %1925 = vadd.xlane.f32.xlu1 %v1924_v33  ;;  %2701 = vpow2.f32 %v1809_v8  ;;  %v1805_v30 = vmul.f32 1.442695, %v1693_v46  ;;  %v1691_v46 = vsub.f32 %v3803_v26, %v4021_v63 }
 0x733   : > { %v1641_v38 = vpop.xlane.xlu1 %1640  ;;  %v4075_v22 = vmul.f32 %v2696_v5, %v3915_v42  ;;  %v4081_v20 = vmul.f32 %v2696_v5, %v3917_v25  ;;  %v1651_v25 = vsub.f32 %v3691_v49, %v4005_v52  ;;  %2703 = vpow2.f32 %v1811_v36 }
 0x734   : > { %v1705_v1 = vsub.f32 %v3897_v60, %v1641_v38  ;;  %v1706_v58 = vsub.f32 %v3899_v24, %v1641_v38  ;;  %v1652_v24 = vsub.f32 %v3693_v17, %v4005_v52  ;;  %v1807_v38 = vmul.f32 1.442695, %v1694_v53 }
 0x735   : > { %v1721_v51 = vmul.f32 1.442695, %v1651_v25  ;;  %v1649_v49 = vsub.f32 %v3687_v50, %v3985_v11  ;;  %v1650_v17 = vsub.f32 %v3689_v45, %v3985_v11 }
 0x736   : > { %v4093_v31 = vpop.eup %2697  ;;  %v1829_v13 = vmul.f32 1.442695, %v1705_v1  ;;  %v1831_v33 = vmul.f32 1.442695, %v1706_v58  ;;  %v1723_v8 = vmul.f32 1.442695, %v1652_v24 }
 0x737   : > { %v4097_v60 = vpop.eup %2699  ;;  %v4579_v58 = vld [vmem:[#allocation26_spill] sm:$0xff]  ;;  %v1717_v25 = vmul.f32 1.442695, %v1649_v49  ;;  %v1719_v45 = vmul.f32 1.442695, %v1650_v17  ;;  %v1647_v49 = vsub.f32 %v3681_v54, %v4031_v21  ;;  %v1648_v17 = vsub.f32 %v3683_v62, %v4031_v21  ;;  %v4582_v62 = vld [vmem:[#allocation33_spill] sm:$0xff] }
 0x738   : > { %2705 = vpow2.f32 %v1829_v13  ;;  %v1930_v5 = vadd.f32 %v4097_v60, %v4093_v31  ;;  %v4103_v55 = vpop.eup %2701  ;;  %v1692_v53 = vsub.f32 %v4579_v58, %v4021_v63  ;;  %v4580_v63 = vld [vmem:[#allocation22_spill] sm:$0xff]  ;;  %v1645_v21 = vsub.f32 %v4582_v62, %v4019_v32  ;;  %v4584_v62 = vld [vmem:[#allocation21_spill] sm:$0xff] }
 0x739   : > { %2707 = vpow2.f32 %v1831_v33  ;;  %v4107_v36 = vpop.eup %2703  ;;  %v1801_v33 = vmul.f32 1.442695, %v1691_v46  ;;  %v1715_v54 = vmul.f32 1.442695, %v1648_v17 }
 0x73a   : > { %1931 = vadd.xlane.f32.xlu1 %v1930_v5  ;;  %2709 = vpow2.f32 %v1805_v30  ;;  %v1912_v13 = vadd.f32 %v4107_v36, %v4103_v55  ;;  %v1803_v24 = vmul.f32 1.442695, %v1692_v53  ;;  %v1689_v5 = vsub.f32 %v4580_v63, %v4003_v59  ;;  %v4583_v63 = vld [vmem:[#allocation18_spill] sm:$0xff] }
 0x73b   : > { %2711 = vpow2.f32 %v1807_v38  ;;  %v1709_v17 = vmul.f32 1.442695, %v1645_v21  ;;  %v1686_v21 = vsub.f32 %v4584_v62, %v4029_v15 }
 0x73c   : > { %2713 = vpow2.f32 %v1721_v51  ;;  %v4581_v51 = vld [vmem:[#allocation25_spill] sm:$0xff]  ;;  %v1797_v46 = vmul.f32 1.442695, %v1689_v5  ;;  %v1646_v5 = vsub.f32 %v4583_v63, %v4019_v32 }
 0x73d   : > { %2715 = vpow2.f32 %v1723_v8  ;;  %v1690_v8 = vsub.f32 %v4581_v51, %v4003_v59  ;;  %v4157_v51 = vpop.xlane.xlu2 %1598 }
 0x73e   : > { %v4111_v52 = vpop.eup %2705  ;;  %2717 = vpow2.f32 %v1717_v25 }
 0x73f   : > { %v4115_v1 = vpop.eup %2707  ;;  %2719 = vpow2.f32 %v1719_v45  ;;  %v1799_v25 = vmul.f32 1.442695, %v1690_v8  ;;  %v4147_v45 = vpop.xlane.xlu1 %1601  ;;  %v1687_v8 = vsub.f32 %v3795_v10, %v4035_v39 }
 0x740   : > { %v1927_v50 = vadd.f32 %v4115_v1, %v4111_v52  ;;  %v4123_v11 = vpop.eup %2709  ;;  %2721 = vpow2.f32 %v1801_v33 }
 0x741   : > { %v4125_v26 = vpop.eup %2711  ;;  %2723 = vpow2.f32 %v1803_v24  ;;  %v1793_v32 = vmul.f32 1.442695, %v1687_v8  ;;  %v4585_v8 = vld [vmem:[#allocation32_spill] sm:$0xff] }
 0x742   : > { %1928 = vadd.xlane.f32.xlu2 %v1927_v50  ;;  %1913 = vadd.xlane.f32.xlu1 %v1912_v13  ;;  %v4127_v30 = vpop.eup %2713  ;;  %v1909_v58 = vadd.f32 %v4125_v26, %v4123_v11  ;;  %v1713_v13 = vmul.f32 1.442695, %v1647_v49  ;;  %2725 = vpow2.f32 %v1797_v46  ;;  %v1688_v49 = vsub.f32 %v3797_v12, %v4035_v39 }
 0x743   : > { %v4131_v38 = vpop.eup %2715  ;;  %2727 = vpow2.f32 %v1799_v25  ;;  %v1685_v12 = vsub.f32 %v3791_v0, %v4029_v15  ;;  %v1791_v15 = vmul.f32 1.442695, %v1686_v21  ;;  %v1682_v21 = vsub.f32 %v4587_v3, %v4033_v23 }
 0x744   : > { %v1846_v53 = vadd.f32 %v4131_v38, %v4127_v30  ;;  %v4143_v50 = vpop.eup %2717  ;;  %2729 = vpow2.f32 %v1713_v13  ;;  %v1795_v10 = vmul.f32 1.442695, %v1688_v49  ;;  %v1684_v49 = vsub.f32 %v4585_v8, %v4037_v16 }
 0x745   : > { %v4145_v59 = vpop.eup %2719  ;;  %2731 = vpow2.f32 %v1715_v54 }
 0x746   : > { %v4149_v33 = vpop.eup %2721  ;;  %v1843_v46 = vadd.f32 %v4145_v59, %v4143_v50  ;;  %2733 = vpow2.f32 %v1709_v17  ;;  %v4185_v17 = vpop.xlane.xlu2 %1862 }
 0x747   : > { %v4153_v24 = vpop.eup %2723  ;;  %v4179_v63 = vpop.xlane.xlu1 %1865 }
 0x748   : > { %v4167_v25 = vpop.eup %2725 }
 0x749   : > { %v4169_v13 = vpop.eup %2727 }
 0x74a   : > { %1910 = vadd.xlane.f32.xlu2 %v1909_v58  ;;  %1847 = vadd.xlane.f32.xlu1 %v1846_v53  ;;  %v1906_v58 = vadd.f32 %v4153_v24, %v4149_v33  ;;  %v1711_v53 = vmul.f32 1.442695, %v1646_v5  ;;  %v4171_v54 = vpop.eup %2729  ;;  %v1683_v5 = vsub.f32 %v3787_v14, %v4037_v16  ;;  %v1903_v0 = vadd.f32 %v4169_v13, %v4167_v25  ;;  %v4586_v16 = vld [vmem:[#allocation34_spill] sm:$0xff] }
 0x74b   : > { %v4175_v39 = vpop.eup %2731 }
 0x74c   : > { %2735 = vpow2.f32 %v1711_v53  ;;  %v4191_v53 = vpop.eup %2733 }
 0x74d   : > { %2737 = vpow2.f32 %v1793_v32  ;;  %v1785_v32 = vmul.f32 1.442695, %v1683_v5  ;;  %v1679_v5 = vsub.f32 %v3779_v7, %v4147_v45 }
 0x74e   : > { %2739 = vpow2.f32 %v1795_v10  ;;  %v1787_v10 = vmul.f32 1.442695, %v1684_v49  ;;  %v1680_v49 = vsub.f32 %v3781_v48, %v4147_v45  ;;  %v4213_v2 = vpop.xlane.xlu2 %1856 }
 0x74f   : > { %v1777_v3 = vmul.f32 1.442695, %v1679_v5 }
 0x750   : > { %v1779_v48 = vmul.f32 1.442695, %v1680_v49 }
 0x752   : > { %1844 = vadd.xlane.f32.xlu2 %v1843_v46  ;;  %1907 = vadd.xlane.f32.xlu1 %v1906_v58  ;;  %v1789_v46 = vmul.f32 1.442695, %v1685_v12  ;;  %v1840_v58 = vadd.f32 %v4175_v39, %v4171_v54  ;;  %v4193_v14 = vpop.eup %2735  ;;  %v1681_v12 = vsub.f32 %v4586_v16, %v4033_v23  ;;  %v1783_v16 = vmul.f32 1.442695, %v1682_v21 }
 0x753   : > { %v4195_v62 = vpop.eup %2737 }
 0x754   : > { %2741 = vpow2.f32 %v1789_v46  ;;  %v4199_v8 = vpop.eup %2739  ;;  %v1781_v46 = vmul.f32 1.442695, %v1681_v12  ;;  %v1678_v12 = vsub.f32 %v3775_v19, %v4157_v51 }
 0x755   : > { %2743 = vpow2.f32 %v1791_v15  ;;  %v1900_v15 = vadd.f32 %v4199_v8, %v4195_v62 }
 0x756   : > { %2745 = vpow2.f32 %v1785_v32 }
 0x757   : > { %2747 = vpow2.f32 %v1787_v10  ;;  %v1677_v10 = vsub.f32 %v3773_v44, %v4157_v51  ;;  %v2897_v51 = vmov 0  }
 0x758   : > { %2749 = vpow2.f32 %v1781_v46  ;;  %2431 = vset.pattern.permute.xlu1 %v2897_v51  ;;  %2432 = vset.pattern.permute.xlu0 %v2897_v51 }
 0x759   : > { %2751 = vpow2.f32 %v1783_v16  ;;  %v1775_v16 = vmul.f32 1.442695, %v1678_v12 }
 0x75a   : > { %1904 = vadd.xlane.f32.xlu2 %v1903_v0  ;;  %1841 = vadd.xlane.f32.xlu1 %v1840_v58  ;;  %v4207_v0 = vpop.xlane.xlu1 %1859  ;;  %v1837_v58 = vadd.f32 %v4193_v14, %v4191_v53  ;;  %v4215_v23 = vpop.eup %2741  ;;  %2753 = vpow2.f32 %v1777_v3 }
 0x75b   : > { %v4217_v7 = vpop.eup %2743  ;;  %2755 = vpow2.f32 %v1779_v48 }
 0x75c   : > { %v4219_v45 = vpop.eup %2745  ;;  %v1897_v5 = vadd.f32 %v4217_v7, %v4215_v23  ;;  %2757 = vrcp.f32 %v4039_v37  ;;  %v4593_v37 = vld [vmem:[#allocation29_spill] sm:$0xff] }
 0x75d   : > { %4588 = vst [vmem:[#allocation19_spill] sm:$0xff] %v4219_v45  ;;  %v4221_v32 = vpop.eup %2747  ;;  %v4233_v46 = vpop.xlane.xlu2 %1850 }
 0x75e   : > { %4589 = vst [vmem:[#allocation20_spill] sm:$0xff] %v4221_v32  ;;  %v1894_v49 = vadd.f32 %v4221_v32, %v4219_v45 }
 0x762   : > { %1838 = vadd.xlane.f32.xlu2 %v1837_v58  ;;  %1901 = vadd.xlane.f32.xlu1 %v1900_v15  ;;  %v4235_v58 = vpop.eup %2749  ;;  %v1773_v15 = vmul.f32 1.442695, %v1677_v10 }
 0x763   : > { %v4237_v44 = vpop.eup %2751 }
 0x764   : > { %4590 = vst [vmem:[#allocation26_spill] sm:$0xff] %v4237_v44  ;;  %v4239_v19 = vpop.eup %2753  ;;  %2759 = vpow2.f32 %v1773_v15  ;;  %v1891_v10 = vadd.f32 %v4237_v44, %v4235_v58 }
 0x765   : > { %v4227_v21 = vpop.xlane.xlu1 %1853  ;;  %4591 = vst [vmem:[#allocation22_spill] sm:$0xff] %v4239_v19  ;;  %v4241_v3 = vpop.eup %2755  ;;  %2761 = vpow2.f32 %v1775_v16  ;;  %v4594_v16 = vld [vmem:[#allocation30_spill] sm:$0xff] }
 0x766   : > { %4592 = vst [vmem:[#allocation25_spill] sm:$0xff] %v4241_v3  ;;  %v2758_v12 = vpop.eup %2757 }
 0x767   : > { %v1993_v15 = vmul.f32 %v2758_v12, %v4593_v37 }
 0x76a   : > { %1898 = vadd.xlane.f32.xlu2 %v1897_v5  ;;  %1895 = vadd.xlane.f32.xlu1 %v1894_v49  ;;  %v1888_v5 = vadd.f32 %v4241_v3, %v4239_v19  ;;  %v1917_v49 = vpop.xlane.xlu2 %1916  ;;  %v4248_v9 = vpop.eup %2759 }
 0x76b   : > { %v4250_v51 = vpop.eup %2761 }
 0x76d   : > { %v1884_v48 = vpop.xlane.xlu1 %1883 }
 0x76e   : > { %2763 = vrcp.f32 %v1884_v48  ;;  %v1994_v48 = vmul.f32 %v2758_v12, %v4594_v16  ;;  %v4603_v16 = vld [vmem:[#allocation15_spill] sm:$0xff] }
 0x76f   : > { %2765 = vrcp.f32 %v1917_v49 }
 0x772   : > { %1892 = vadd.xlane.f32.xlu2 %v1891_v10  ;;  %1889 = vadd.xlane.f32.xlu1 %v1888_v5  ;;  %v1885_v10 = vadd.f32 %v4250_v51, %v4248_v9 }
 0x774   : > { %v2764_v42 = vpop.eup %2763 }
 0x775   : > { %v1995_v32 = vmul.f32 %v2764_v42, %v4011_v41  ;;  %v1996_v45 = vmul.f32 %v2764_v42, %v4013_v18  ;;  %v1920_v44 = vpop.xlane.xlu1 %1919  ;;  %v2766_v19 = vpop.eup %2765 }
 0x776   : > { %2767 = vrcp.f32 %v1920_v44  ;;  %v4259_v37 = vmul.f32 %v2766_v19, %v3989_v57  ;;  %v4265_v41 = vmul.f32 %v2766_v19, %v3991_v27  ;;  %v4596_v57 = vpack.c.bf16 %v4081_v20, %v4078_v35  ;;  %v447_v27 = vld [vmem:[%s4413_s5] sm:$0xff]  ;;  %v4599_v20 = vld [vmem:[#allocation5_spill] sm:$0xff] }
 0x777   : > { %v2043_v5 = vpack.c.bf16 %v1995_v32, %v1993_v15  ;;  %v2044_v3 = vpack.c.bf16 %v1996_v45, %v1994_v48  ;;  %v4595_v32 = vpack.c.bf16 %v4075_v22, %v4072_v47  ;;  %2769 = vrcp.f32 %v4179_v63  ;;  %v4601_v19 = vld [vmem:[#allocation24_spill] sm:$0xff]  ;;  %v4604_v48 = vld [vmem:[#allocation6_spill] sm:$0xff] }
 0x778   : > { %2771 = vrcp.f32 %v4185_v17  ;;  %v4598_v47 = vpack.c.bf16 %v4053_v43, %v4050_v61  ;;  %v4600_v17 = vld [vmem:[#allocation23_spill] sm:$0xff]  ;;  %v4602_v43 = vld [vmem:[#allocation28_spill] sm:$0xff] }
 0x779   : > { %2061 = vmatpush.bf16.xpose.msra.mxu0 %v2043_v5  ;;  %2074 = vmatpush.bf16.xpose.msra.mxu1 %v2044_v3  ;;  %2773 = vrcp.f32 %v4207_v0 }
 0x77a   : > { %1886 = vadd.xlane.f32.xlu2 %v1885_v10  ;;  %2775 = vrcp.f32 %v4213_v2  ;;  %v4605_v10 = vld [vmem:[#allocation27_spill] sm:$0xff] }
 0x77b   : > { %2777 = vrcp.f32 %v4227_v21 }
 0x77c   : > { %v2768_v49 = vpop.eup %2767  ;;  %2779 = vrcp.f32 %v4233_v46 }
 0x77d   : > { %v4262_v12 = vmul.f32 %v2768_v49, %v4023_v29  ;;  %v4268_v18 = vmul.f32 %v2768_v49, %v4025_v34  ;;  %v2770_v29 = vpop.eup %2769  ;;  %v4597_v34 = vpack.c.bf16 %v4047_v4, %v4044_v40 }
 0x77e   : > { %v2772_v22 = vpop.eup %2771  ;;  %v1983_v35 = vmul.f32 %v2770_v29, %v3947_v6  ;;  %v1984_v63 = vmul.f32 %v2770_v29, %v4599_v20  ;;  %v4606_v29 = vld [vmem:[#allocation11_spill] sm:$0xff]  ;;  %v4609_v20 = vld [vmem:[#allocation16_spill] sm:$0xff] }
 0x77f   : > { %v2055_v42 = vpack.c.bf16 %v4262_v12, %v4259_v37  ;;  %v2056_v45 = vpack.c.bf16 %v4268_v18, %v4265_v41  ;;  %v1981_v44 = vmul.f32 %v2772_v22, %v4600_v17  ;;  %v1982_v3 = vmul.f32 %v2772_v22, %v4601_v19  ;;  %v2774_v15 = vpop.eup %2773  ;;  %v4608_v22 = vld [vmem:[#allocation9_spill] sm:$0xff]  ;;  %v2373_v19 = vld [vmem:[%s4412_s4] sm:$0xff] }
 0x780   : > { %v2776_v61 = vpop.eup %2775  ;;  %v1979_v0 = vmul.f32 %v2774_v15, %v4602_v43  ;;  %v1980_v6 = vmul.f32 %v2774_v15, %v4603_v16 }
 0x781   : > { %2062 = vmatpush.bf16.xpose.msra.mxu0 %v4595_v32  ;;  %2075 = vmatpush.bf16.xpose.msra.mxu1 %v4596_v57  ;;  %v2037_v4 = vpack.c.bf16 %v1983_v35, %v1981_v44  ;;  %v2038_v40 = vpack.c.bf16 %v1984_v63, %v1982_v3  ;;  %v1977_v2 = vmul.f32 %v2776_v61, %v4604_v48  ;;  %v2778_v57 = vpop.eup %2777  ;;  %v1923_v3 = vpop.xlane.xlu2 %1922 }
 0x782   : > { %v1978_v5 = vmul.f32 %v2776_v61, %v4605_v10 }
 0x783   : > { %v2035_v49 = vpack.c.bf16 %v1979_v0, %v1977_v2 }
 0x784   : > { %v2036_v32 = vpack.c.bf16 %v1980_v6, %v1978_v5 }
 0x789   : > { %2063 = vmatpush.bf16.xpose.msra.mxu0 %v4597_v34  ;;  %2076 = vmatpush.bf16.xpose.msra.mxu1 %v4598_v47  ;;  %v1975_v34 = vmul.f32 %v2778_v57, %v4606_v29  ;;  %v4607_v47 = vld [vmem:[#allocation14_spill] sm:$0xff] }
 0x78a   : > { %v1976_v21 = vmul.f32 %v2778_v57, %v4607_v47 }
 0x78b   : > { %450 = vperm.xlu1 %2431, %v447_v27   ;;  %v2780_v27 = vpop.eup %2779 }
 0x78c   : > { %v1973_v35 = vmul.f32 %v2780_v27, %v4608_v22  ;;  %v1974_v63 = vmul.f32 %v2780_v27, %v4609_v20 }
 0x78e   : > { %v2033_v17 = vpack.c.bf16 %v1975_v34, %v1973_v35  ;;  %v2034_v46 = vpack.c.bf16 %v1976_v21, %v1974_v63 }
 0x791   : > { %2064 = vmatpush.bf16.xpose.msra.mxu0 %v2037_v4  ;;  %2077 = vmatpush.bf16.xpose.msra.mxu1 %v2038_v40 }
 0x799   : > { %2065 = vmatpush.bf16.xpose.msra.mxu0 %v2035_v49  ;;  %2078 = vmatpush.bf16.xpose.msra.mxu1 %v2036_v32 }
 0x7a1   : > { %2066 = vmatpush.bf16.xpose.msra.mxu0 %v2033_v17  ;;  %2079 = vmatpush.bf16.xpose.msra.mxu1 %v2034_v46 }
 0x7a3   : > { %2123 = vxpose.xlu2.c.b16.start.end [1/1] (short) (narrow) %v2373_v19, 16 }
 0x7a5   : > { %v1926_v44 = vpop.xlane.xlu1 %1925 }
 0x7ad   : > { %v1932_v4 = vpop.xlane.xlu1 %1931 }
 0x7b5   : > { %v1914_v40 = vpop.xlane.xlu1 %1913  ;;  %v1929_v15 = vpop.xlane.xlu2 %1928 }
 0x7bd   : > { %v1911_v61 = vpop.xlane.xlu2 %1910  ;;  %v1848_v43 = vpop.xlane.xlu1 %1847 }
 0x7be   : > { %2781 = vrcp.f32 %v1848_v43 }
 0x7c4   : > { %v2782_v6 = vpop.eup %2781 }
 0x7c5   : > { %v1845_v0 = vpop.xlane.xlu2 %1844  ;;  %v4310_v16 = vpop.xlane.xlu1 %1907  ;;  %v1971_v5 = vmul.f32 %v2782_v6, %v4127_v30  ;;  %v1972_v32 = vmul.f32 %v2782_v6, %v4131_v38 }
 0x7c6   : > { %2783 = vrcp.f32 %v1845_v0  ;;  %v4613_v0 = vld [vmem:[#allocation36_spill] sm:$0xff] }
 0x7c7   : > { %2785 = vrcp.f32 %v1929_v15 }
 0x7cc   : > { %v2784_v48 = vpop.eup %2783 }
 0x7cd   : > { %v1905_v2 = vpop.xlane.xlu2 %1904  ;;  %v1969_v10 = vmul.f32 %v2784_v48, %v4143_v50  ;;  %v1970_v49 = vmul.f32 %v2784_v48, %v4145_v59  ;;  %v1842_v29 = vpop.xlane.xlu1 %1841 }
 0x7ce   : > { %2787 = vrcp.f32 %v1842_v29  ;;  %v2786_v47 = vpop.eup %2785 }
 0x7cf   : > { %v2031_v57 = vpack.c.bf16 %v1971_v5, %v1969_v10  ;;  %v2032_v27 = vpack.c.bf16 %v1972_v32, %v1970_v49  ;;  %2789 = vrcp.f32 %v1932_v4  ;;  %v2025_v30 = vmul.f32 %v2786_v47, %v4111_v52 }
 0x7d0   : > { %v2026_v38 = vmul.f32 %v2786_v47, %v4115_v1 }
 0x7d1   : > { %2067 = vmatpush.bf16.xpose.msra.mxu0 %v2031_v57  ;;  %2080 = vmatpush.bf16.xpose.msra.mxu1 %v2032_v27 }
 0x7d4   : > { %v2788_v21 = vpop.eup %2787 }
 0x7d5   : > { %v1839_v34 = vpop.xlane.xlu2 %1838  ;;  %v2790_v22 = vpop.eup %2789  ;;  %v1967_v35 = vmul.f32 %v2788_v21, %v4171_v54  ;;  %v1968_v63 = vmul.f32 %v2788_v21, %v4175_v39 }
 0x7d6   : > { %2791 = vrcp.f32 %v1839_v34  ;;  %v2027_v17 = vmul.f32 %v2790_v22, %v4093_v31  ;;  %v2028_v46 = vmul.f32 %v2790_v22, %v4097_v60  ;;  %v4611_v31 = vld [vmem:[#allocation10_spill] sm:$0xff] }
 0x7d7   : > { %2793 = vrcp.f32 %v1926_v44  ;;  %v4332_v60 = vpack.c.bf16 %v4611_v31, %v4611_v31 }
 0x7d8   : > { %2795 = vrcp.f32 %v1923_v3  ;;  %v2059_v4 = vpack.c.bf16 %v2027_v17, %v2025_v30  ;;  %v2060_v3 = vpack.c.bf16 %v2028_v46, %v2026_v38 }
 0x7d9   : > { %2797 = vrcp.f32 %v1911_v61  ;;  %v1902_v61 = vpop.xlane.xlu1 %1901 }
 0x7da   : > { %2799 = vrcp.f32 %v1914_v40 }
 0x7db   : > { %2801 = vrcp.f32 %v1905_v2 }
 0x7dc   : > { %v2792_v50 = vpop.eup %2791  ;;  %2803 = vrcp.f32 %v4310_v16 }
 0x7dd   : > { %v1965_v59 = vmul.f32 %v2792_v50, %v4191_v53  ;;  %v1966_v20 = vmul.f32 %v2792_v50, %v4193_v14  ;;  %v2794_v15 = vpop.eup %2793  ;;  %v4610_v53 = vld [vmem:[#allocation17_spill] sm:$0xff]  ;;  %v4612_v14 = vld [vmem:[#allocation35_spill] sm:$0xff]  ;;  %v1899_v5 = vpop.xlane.xlu2 %1898 }
 0x7de   : > { %v2796_v52 = vpop.eup %2795  ;;  %v2023_v1 = vmul.f32 %v2794_v15, %v4061_v56  ;;  %v2024_v54 = vmul.f32 %v2794_v15, %v4067_v28  ;;  %v4328_v39 = vpack.c.bf16 %v4610_v53, %v4610_v53  ;;  %2805 = vrcp.f32 %v1899_v5 }
 0x7df   : > { %v2029_v19 = vpack.c.bf16 %v1967_v35, %v1965_v59  ;;  %v2030_v44 = vpack.c.bf16 %v1968_v63, %v1966_v20  ;;  %v2021_v43 = vmul.f32 %v2796_v52, %v4612_v14  ;;  %v2022_v6 = vmul.f32 %v2796_v52, %v4613_v0  ;;  %v2798_v28 = vpop.eup %2797  ;;  %v4614_v59 = vld [vmem:[#allocation26_spill] sm:$0xff]  ;;  %v4616_v20 = vld [vmem:[#allocation20_spill] sm:$0xff] }
 0x7e0   : > { %v2800_v10 = vpop.eup %2799  ;;  %v2013_v49 = vmul.f32 %v2798_v28, %v4123_v11  ;;  %v2014_v32 = vmul.f32 %v2798_v28, %v4125_v26  ;;  %2807 = vrcp.f32 %v1902_v61  ;;  %v4619_v14 = vld [vmem:[#allocation12_spill] sm:$0xff]  ;;  %v4620_v28 = vld [vmem:[#allocation13_spill] sm:$0xff] }
 0x7e1   : > { %2068 = vmatpush.bf16.xpose.msra.mxu0 %v2029_v19  ;;  %2081 = vmatpush.bf16.xpose.msra.mxu1 %v2030_v44  ;;  %v2057_v48 = vpack.c.bf16 %v2023_v1, %v2021_v43  ;;  %v2058_v56 = vpack.c.bf16 %v2024_v54, %v2022_v6  ;;  %v2015_v40 = vmul.f32 %v2800_v10, %v4103_v55  ;;  %v1896_v55 = vpop.xlane.xlu1 %1895 }
 0x7e2   : > { %v2016_v57 = vmul.f32 %v2800_v10, %v4107_v36 }
 0x7e3   : > { %v2053_v37 = vpack.c.bf16 %v2015_v40, %v2013_v49  ;;  %v4621_v49 = vld [vmem:[#allocation7_spill] sm:$0xff] }
 0x7e4   : > { %v2054_v12 = vpack.c.bf16 %v2016_v57, %v2014_v32 }
 0x7e5   : > { %v1893_v26 = vpop.xlane.xlu2 %1892 }
 0x7e6   : > { %2809 = vrcp.f32 %v1893_v26 }
 0x7e7   : > { %2811 = vrcp.f32 %v1896_v55 }
 0x7e8   : > { %2069 = vmatmul.bf16.vlgmr.msra.gmra.mxu0 %v4328_v39  ;;  %2082 = vmatmul.bf16.vlgmr.msra.gmra.mxu1 %v4332_v60 }
 0x7e9   : > { %2087 = vmatpush.bf16.xpose.msrb.mxu0 %v2059_v4  ;;  %2100 = vmatpush.bf16.xpose.msrb.mxu1 %v2060_v3  ;;  %v1890_v50 = vpop.xlane.xlu1 %1889  ;;  %v4617_v4 = vld [vmem:[#allocation22_spill] sm:$0xff] }
 0x7f1   : > { %2088 = vmatpush.bf16.xpose.msrb.mxu0 %v2057_v48  ;;  %2101 = vmatpush.bf16.xpose.msrb.mxu1 %v2058_v56 }
 0x7f9   : > { %2089 = vmatpush.bf16.xpose.msrb.mxu0 %v2055_v42  ;;  %2102 = vmatpush.bf16.xpose.msrb.mxu1 %v2056_v45  ;;  %v2802_v42 = vpop.eup %2801 }
 0x7fa   : > { %v2804_v41 = vpop.eup %2803  ;;  %v2009_v18 = vmul.f32 %v2802_v42, %v4167_v25  ;;  %v2010_v11 = vmul.f32 %v2802_v42, %v4169_v13 }
 0x7fb   : > { %v2011_v45 = vmul.f32 %v2804_v41, %v4149_v33  ;;  %v2012_v16 = vmul.f32 %v2804_v41, %v4153_v24  ;;  %v2806_v27 = vpop.eup %2805  ;;  %v1887_v33 = vpop.xlane.xlu2 %1886 }
 0x7fc   : > { %v2808_v29 = vpop.eup %2807  ;;  %v2005_v34 = vmul.f32 %v2806_v27, %v4215_v23  ;;  %v2006_v25 = vmul.f32 %v2806_v27, %v4217_v7  ;;  %2813 = vrcp.f32 %v1887_v33  ;;  %v4615_v7 = vld [vmem:[#allocation19_spill] sm:$0xff] }
 0x7fd   : > { %v2051_v2 = vpack.c.bf16 %v2011_v45, %v2009_v18  ;;  %v2052_v36 = vpack.c.bf16 %v2012_v16, %v2010_v11  ;;  %v2007_v13 = vmul.f32 %v2808_v29, %v4195_v62  ;;  %v2008_v47 = vmul.f32 %v2808_v29, %v4199_v8  ;;  %v2810_v22 = vpop.eup %2809  ;;  %v451_v5 = vpop.permute.xlu1 %450 }
 0x7fe   : > { %v2812_v30 = vpop.eup %2811  ;;  %v2001_v38 = vmul.f32 %v2810_v22, %v4235_v58  ;;  %v2002_v23 = vmul.f32 %v2810_v22, %v4614_v59  ;;  %2815 = vrcp.f32 %v1890_v50  ;;  %v4618_v58 = vld [vmem:[#allocation25_spill] sm:$0xff]  ;;  %v453_v32 = vadd.f32 %v451_v5, %v4621_v49 }
 0x7ff   : > { %v2049_v21 = vpack.c.bf16 %v2007_v13, %v2005_v34  ;;  %v2050_v24 = vpack.c.bf16 %v2008_v47, %v2006_v25  ;;  %v2003_v35 = vmul.f32 %v2812_v30, %v4615_v7  ;;  %v2004_v62 = vmul.f32 %v2812_v30, %v4616_v20 }
 0x801   : > { %2090 = vmatpush.bf16.xpose.msrb.mxu0 %v2053_v37  ;;  %2103 = vmatpush.bf16.xpose.msrb.mxu1 %v2054_v12  ;;  %v2047_v63 = vpack.c.bf16 %v2003_v35, %v2001_v38  ;;  %v2048_v8 = vpack.c.bf16 %v2004_v62, %v2002_v23  ;;  %v4622_v37 = vld [vmem:[#allocation8_spill] sm:$0xff] }
 0x802   : > { %v2814_v17 = vpop.eup %2813  ;;  %v454_v12 = vadd.f32 %v451_v5, %v4622_v37 }
 0x803   : > { %v1997_v19 = vmul.f32 %v2814_v17, %v4248_v9  ;;  %v1998_v44 = vmul.f32 %v2814_v17, %v4250_v51 }
 0x804   : > { %v2816_v46 = vpop.eup %2815 }
 0x805   : > { %v1999_v3 = vmul.f32 %v2816_v46, %v4617_v4  ;;  %v2000_v15 = vmul.f32 %v2816_v46, %v4618_v58 }
 0x807   : > { %v2045_v52 = vpack.c.bf16 %v1999_v3, %v1997_v19  ;;  %v2046_v1 = vpack.c.bf16 %v2000_v15, %v1998_v44 }
 0x809   : > { %2091 = vmatpush.bf16.xpose.msrb.mxu0 %v2051_v2  ;;  %2104 = vmatpush.bf16.xpose.msrb.mxu1 %v2052_v36 }
 0x811   : > { %2092 = vmatpush.bf16.xpose.msrb.mxu0 %v2049_v21  ;;  %2105 = vmatpush.bf16.xpose.msrb.mxu1 %v2050_v24 }
 0x819   : > { %2093 = vmatpush.bf16.xpose.msrb.mxu0 %v2047_v63  ;;  %2106 = vmatpush.bf16.xpose.msrb.mxu1 %v2048_v8 }
 0x821   : > { %2094 = vmatpush.bf16.xpose.msrb.mxu0 %v2045_v52  ;;  %2107 = vmatpush.bf16.xpose.msrb.mxu1 %v2046_v1 }
 0x828   : > { %2095 = vmatmul.bf16.vlgmr.msrb.gmra.mxu0 %v4328_v39  ;;  %2108 = vmatmul.bf16.vlgmr.msrb.gmra.mxu1 %v4332_v60 }
 0x844   : > { %v2131_v51 = vpop.trf.xlu2 }
 0x865   : > { %v2070_v54 = vpop.f32.mrf.mxu0  ;;  %v2083_v53 = vpop.f32.mrf.mxu1 }
 0x866   : > { %v2084_v31 = vadd.f32 %v2083_v53, %v2070_v54 }
 0x868   : > { %v2113_v9 = vpack.c.bf16 %v2084_v31, %v4619_v14 }
 0x86a   : > { %2150 = vmatpush.bf16.msra.mxu0 %v2113_v9 }
 0x86d   : > { %v2072_v43 = vpop.f32.mrf.mxu0  ;;  %v2085_v0 = vpop.f32.mrf.mxu1  ;;  %2364 = vmatmul.msk.bf16.vlgmr.msra.gmra.mxu0 %vm2139_vm6, %v2131_v51 }
 0x8a5   : > { %v2096_v6 = vpop.f32.mrf.mxu0  ;;  %v2109_v48 = vpop.f32.mrf.mxu1 }
 0x8a6   : > { %v2110_v56 = vadd.f32 %v2109_v48, %v2096_v6 }
 0x8a8   : > { %v2114_v39 = vpack.c.bf16 %v2110_v56, %v4620_v28 }
 0x8aa   : > { %2163 = vmatpush.bf16.msra.mxu1 %v2114_v39 }
 0x8ad   : > { %v2098_v60 = vpop.f32.mrf.mxu0  ;;  %v2111_v10 = vpop.f32.mrf.mxu1  ;;  %2365 = vmatmul.msk.bf16.vlgmr.msra.gmra.mxu1 %vm2139_vm6, %v2131_v51 }
 0x8ea   : > { %v2152_v61 = vpop.f32.mrf.mxu0 }
 0x8eb   : > { %v2153_v40 = vadd.f32 %v2152_v61, %v453_v32 }
 0x8ed   : > { %2169 = vst [vmem:[%s284_s16] sm:$0xff] %v2153_v40 }
 0x8f2   : > { %v2154_v57 = vpop.f32.mrf.mxu0 }
 0x92a   : > { %v2165_v42 = vpop.f32.mrf.mxu1 }
 0x92b   : > { %v2166_v41 = vadd.f32 %v2165_v42, %v454_v12 }
 0x92d   : > { %2170 = vst [vmem:[%s284_s16 + $0x8] sm:$0xff] %v2166_v41 }
 0x92e   : > { %2844 = shalt.err (!%p2841_p5)
}
 0x92f   : > { %2375 = dma.vmem_to_hbm [thread:$0]  (%p2973_p4), %s2188_s27, 256, %s2190_s28, %s2172_s30  }
 0x932   : > { %v2167_v18 = vpop.f32.mrf.mxu1 }
 0x933 PF: > { %p2381_p6 = scmp.ge.s32.totalorder %s2895_s26, 2  ;;  %s2201_s14 = sand.u32 1, %s2875_s21  }
 0x934   : > { %s2202_s16 = scalar_lea.sflag [#allocation3], %s2201_s14 }
 0x935   : > { %p2378_p7 = pnand %p2381_p6, %p2980_p8 }
 0x937   : > { %p2379_p9 = pneg %p2378_p7 }
 0x939   : > { %2870 = dma.done.wait (%p2379_p9), %s2202_s16, 256  }
 0x93a   : > { %2872 = vsyncadd (%p2379_p9), %s2202_s16, 4294967040  ;;  %s19_s26 = sadd.s32 1, %s2895_s26   ;;  %s4623_s21 = smov %s2879_s22 }
 0x93b   : > { %p16_p10 = scmp.ge.s32.totalorder %s19_s26, 4   ;;  %s4624_s22 = smov %s2883_s23 }
 0x93c   : > { %s4625_s23 = smov %s2986_s10  ;;  %s4626_s24 = smov %s2891_s25 }
 0x93d   : > { %s4627_s25 = smov %s4629_s29  ;;  %18 = sbr.rel (!%p16_p10) target bundleno = 4 (0x4), region = 82 }
 0x942   :  { %2208 = vsyncpa [#allocation3], 1 }
 0x943   :  { %2210 = vsyncpa [#allocation3 + $0x1], 1 }

</bundles_post_ra>
